<compile_context>
chip_gen: v5e
topology: v5e:2x2
jax: 0.10.0
libtpu: 0.0.40
codegen_flags: <defaults>
</compile_context>

<pallas_src>
import functools

import jax
import jax.numpy as jnp
import numpy as np
from jax.experimental import pallas as pl
from jax.experimental.pallas import tpu as pltpu


# ----------------------------- Pallas kernel ---------------------------------
def _encoder_kernel(x_ref,
                    wq_ref, wk_ref, wv_ref, wo_ref,      # per-head MHA weights (bf16)
                    w1_ref, b1_ref, w2_ref, b2_ref,      # PWFFN weights / biases
                    g0_ref, be0_ref,                     # Encoder-entry LayerNorm
                    g1_ref, be1_ref,                     # AddAndNorm after MHA
                    g2_ref, be2_ref,                     # AddAndNorm after PWFFN
                    o_ref,
                    *, n_layers, eps):
    b_tile, nw, d_model = x_ref.shape
    n_heads, _, d_k = wq_ref.shape
    d_ff = w1_ref.shape[-1]
    m = b_tile * nw
    inv_scale = jnp.float32(1.0 / np.sqrt(d_k))

    # Weights: loaded once per grid step; bf16 MXU operands.
    wq = wq_ref[...]                       # (h, d_model, d_k)
    wk = wk_ref[...]
    wv = wv_ref[...]
    wo = wo_ref[...]                       # (h, d_k, d_model)
    w1 = w1_ref[...]                       # (d_model, d_ff)
    w2 = w2_ref[...]                       # (d_ff, d_model)

    # Hoisted broadcasts (computed once, reused by every layer iteration).
    b1 = jnp.broadcast_to(b1_ref[...].astype(jnp.float32), (m, d_ff))
    b2 = jnp.broadcast_to(b2_ref[...].astype(jnp.float32), (m, d_model))
    g0 = jnp.broadcast_to(g0_ref[...], (m, d_model))
    be0 = jnp.broadcast_to(be0_ref[...], (m, d_model))
    g1 = jnp.broadcast_to(g1_ref[...], (m, d_model))
    be1 = jnp.broadcast_to(be1_ref[...], (m, d_model))
    g2 = jnp.broadcast_to(g2_ref[...], (m, d_model))
    be2 = jnp.broadcast_to(be2_ref[...], (m, d_model))

    def layer_norm(z, g, b):
        # One-pass statistics: var = E[z^2] - E[z]^2  (single extra reduction).
        mean = jnp.mean(z, axis=-1, keepdims=True)
        mean_sq = jnp.mean(z * z, axis=-1, keepdims=True)
        var = mean_sq - mean * mean
        return (z - mean) * jax.lax.rsqrt(var + eps) * g + b

    # (h, m, d) x (h, d, k) -> (h, m, k): head-batched projection.
    dn_proj = (((2,), (1,)), ((0,), (0,)))

    x = x_ref[...].astype(jnp.float32).reshape(m, d_model)   # fold (b, nw) -> rows
    x = layer_norm(x, g0, be0)                                # Encoder entry norm

    def layer_body(_, x):
        xm = x.astype(jnp.bfloat16)
        xh = jnp.broadcast_to(xm[None], (n_heads, m, d_model))

        # -------- Multi-Head Attention (heads folded into batch dim) --------
        q = jax.lax.dot_general(xh, wq, dn_proj,
                                preferred_element_type=jnp.float32).astype(jnp.bfloat16)
        k = jax.lax.dot_general(xh, wk, dn_proj,
                                preferred_element_type=jnp.float32).astype(jnp.bfloat16)
        v = jax.lax.dot_general(xh, wv, dn_proj,
                                preferred_element_type=jnp.float32).astype(jnp.bfloat16)

        # Fold (head, batch) into one attention batch axis (leading-dim reshape
        # only: nw is the sublane axis, no relayout / lane shuffles).
        q = q.reshape(n_heads * b_tile, nw, d_k)
        k = k.reshape(n_heads * b_tile, nw, d_k)
        v = v.reshape(n_heads * b_tile, nw, d_k)

        scores = jnp.einsum('bqd,bkd->bqk', q, k,
                            preferred_element_type=jnp.float32) * inv_scale
        scores = scores - jnp.max(scores, axis=-1, keepdims=True)
        e = jnp.exp(scores)
        probs = e * pl.reciprocal(jnp.sum(e, axis=-1, keepdims=True), approx=True)

        attn = jnp.einsum('bqk,bkd->bqd', probs.astype(jnp.bfloat16), v,
                          preferred_element_type=jnp.float32)

        # Output projection: per-head row blocks of W_O, summed over heads.
        # (head column blocks are disjoint, so sum == concat(heads) @ W_O.)
        attn = attn.reshape(n_heads, m, d_k).astype(jnp.bfloat16)
        mha = jax.lax.dot_general(attn, wo, dn_proj,
                                  preferred_element_type=jnp.float32)
        mha = jnp.sum(mha, axis=0)                           # (m, d_model)

        x = layer_norm(x + mha, g1, be1)

        # -------- Position-wise Feed-Forward --------
        hid = jnp.dot(x.astype(jnp.bfloat16), w1,
                      preferred_element_type=jnp.float32) + b1
        hid = jnp.maximum(hid, 0.0)
        ffn = jnp.dot(hid.astype(jnp.bfloat16), w2,
                      preferred_element_type=jnp.float32) + b2

        x = layer_norm(x + ffn, g2, be2)
        return x

    x = jax.lax.fori_loop(0, n_layers, layer_body, x)
    o_ref[...] = x.reshape(b_tile, nw, d_model).astype(o_ref.dtype)


# ------------------------------ wrapper ---------------------------------------
def encoder_forward(x, params, *, n_layers, n_heads, batch_tile=None):
    nb, nw, d_model = x.shape
    d_ff = params["w1"].shape[1]
    d_k = d_model // n_heads

    # Batch tile: push the matmul M-dim toward >=128 rows per grid step.
    if batch_tile is None:
        batch_tile = min(nb, max(1, (128 + nw - 1) // nw))
    while nb % batch_tile:
        batch_tile -= 1
    grid = (nb // batch_tile,)

    # Prepare kernel operands: bf16 matmul weights, per-head split done here
    # (wrapper-side layout plumbing, nothing to shuffle inside the kernel).
    cdt = jnp.bfloat16
    wq_h = params["wq"].reshape(d_model, n_heads, d_k).transpose(1, 0, 2).astype(cdt)
    wk_h = params["wk"].reshape(d_model, n_heads, d_k).transpose(1, 0, 2).astype(cdt)
    wv_h = params["wv"].reshape(d_model, n_heads, d_k).transpose(1, 0, 2).astype(cdt)
    wo_h = params["wo"].reshape(n_heads, d_k, d_model).astype(cdt)
    w1 = params["w1"].astype(cdt)
    w2 = params["w2"].astype(cdt)
    f32 = lambda a: a.astype(jnp.float32)

    kernel = functools.partial(_encoder_kernel, n_layers=n_layers, eps=1e-6)

    def _full(shape):
        ndim = len(shape)
        return pl.BlockSpec(shape, lambda i, _n=ndim: (0,) * _n)

    in_specs = [
        pl.BlockSpec((batch_tile, nw, d_model), lambda i: (i, 0, 0)),  # x
        _full((n_heads, d_model, d_k)),   # wq (per-head)
        _full((n_heads, d_model, d_k)),   # wk
        _full((n_heads, d_model, d_k)),   # wv
        _full((n_heads, d_k, d_model)),   # wo
        _full((d_model, d_ff)),           # w1
        _full((1, d_ff)),                 # b1
        _full((d_ff, d_model)),           # w2
        _full((1, d_model)),              # b2
        _full((1, d_model)),              # ln0 gamma
        _full((1, d_model)),              # ln0 beta
        _full((1, d_model)),              # ln1 gamma
        _full((1, d_model)),              # ln1 beta
        _full((1, d_model)),              # ln2 gamma
        _full((1, d_model)),              # ln2 beta
    ]

    return pl.pallas_call(
        kernel,
        out_shape=jax.ShapeDtypeStruct((nb, nw, d_model), x.dtype),
        grid_spec=pltpu.PrefetchScalarGridSpec(
            num_scalar_prefetch=0,
            grid=grid,
            in_specs=in_specs,
            out_specs=pl.BlockSpec((batch_tile, nw, d_model), lambda i: (i, 0, 0)),
        ),
        compiler_params=pltpu.CompilerParams(
            dimension_semantics=("parallel",),
            vmem_limit_bytes=32 * 1024 * 1024,
        ),
    )(x,
      wq_h, wk_h, wv_h, wo_h,
      w1, f32(params["b1"]), w2, f32(params["b2"]),
      f32(params["g0"]), f32(params["be0"]),
      f32(params["g1"]), f32(params["be1"]),
      f32(params["g2"]), f32(params["be2"]))


# --------------------------- pure-JAX reference --------------------------------
def encoder_reference(x, p, *, n_layers, n_heads):
    d_model = x.shape[-1]
    d_k = d_model // n_heads
    eps = 1e-6

    def ln(z, g, b):
        mean = jnp.mean(z, axis=-1, keepdims=True)
        var = jnp.mean((z - mean) ** 2, axis=-1, keepdims=True)
        return (z - mean) / jnp.sqrt(var + eps) * g + b

    x = x.astype(jnp.float32)
    x = ln(x, p["g0"][0], p["be0"][0])
    nb, nw, _ = x.shape
    for _ in range(n_layers):
        q = (x @ p["wq"]).reshape(nb, nw, n_heads, d_k).transpose(0, 2, 1, 3)
        k = (x @ p["wk"]).reshape(nb, nw, n_heads, d_k).transpose(0, 2, 1, 3)
        v = (x @ p["wv"]).reshape(nb, nw, n_heads, d_k).transpose(0, 2, 1, 3)
        scores = jnp.einsum("bhqd,bhkd->bhqk", q, k) / np.sqrt(d_k)
        probs = jax.nn.softmax(scores, axis=-1)
        attn = jnp.einsum("bhqk,bhkd->bhqd", probs, v)
        attn = attn.transpose(0, 2, 1, 3).reshape(nb, nw, d_model)
        mha = attn @ p["wo"]
        x = ln(x + mha, p["g1"][0], p["be1"][0])
        hid = jnp.maximum(x @ p["w1"] + p["b1"][0], 0.0)
        ffn = hid @ p["w2"] + p["b2"][0]
        x = ln(x + ffn, p["g2"][0], p["be2"][0])
    return x


# --------------------------------- main ----------------------------------------
if __name__ == "__main__":
    # Small shapes consistent with the module's [nb, nw, d_model] interface.
    nb, nw, d_model = 2, 8, 32
    n_heads, d_ff, n_layers = 4, 64, 2

    key = jax.random.PRNGKey(0)
    keys = jax.random.split(key, 16)

    def w(k, shape, scale):
        return (scale * jax.random.normal(k, shape)).astype(jnp.float32)

    s_dm = 1.0 / np.sqrt(d_model)
    s_ff = 1.0 / np.sqrt(d_ff)

    # Weights stored already transposed ([in, out]) so y = x @ W matches
    # PyTorch Linear (y = x @ W^T).
    params = {
        "wq": w(keys[0], (d_model, d_model), s_dm),
        "wk": w(keys[1], (d_model, d_model), s_dm),
        "wv": w(keys[2], (d_model, d_model), s_dm),
        "wo": w(keys[3], (d_model, d_model), s_dm),
        "w1": w(keys[4], (d_model, d_ff), s_dm),
        "b1": w(keys[5], (1, d_ff), s_dm),
        "w2": w(keys[6], (d_ff, d_model), s_ff),
        "b2": w(keys[7], (1, d_model), s_ff),
        "g0": (1.0 + 0.1 * jax.random.normal(keys[8], (1, d_model))).astype(jnp.float32),
        "be0": w(keys[9], (1, d_model), 0.1),
        "g1": (1.0 + 0.1 * jax.random.normal(keys[10], (1, d_model))).astype(jnp.float32),
        "be1": w(keys[11], (1, d_model), 0.1),
        "g2": (1.0 + 0.1 * jax.random.normal(keys[12], (1, d_model))).astype(jnp.float32),
        "be2": w(keys[13], (1, d_model), 0.1),
    }

    x = jax.random.normal(keys[14], (nb, nw, d_model), dtype=jnp.float32)

    out = encoder_forward(x, params, n_layers=n_layers, n_heads=n_heads)
    out = jax.block_until_ready(out)

    ref = encoder_reference(x, params, n_layers=n_layers, n_heads=n_heads)
    # Kernel uses bf16 MXU operands (f32 accumulation / element-wise math), so a
    # looser tolerance vs. the f32 reference is expected.
    np.testing.assert_allclose(np.asarray(out), np.asarray(ref), atol=5e-2, rtol=5e-2)

    print("KERNEL_OK")
</pallas_src>

<mosaic_0001>
module attributes {stable_mosaic.version = 11 : i64} {
  func.func @_encoder_kernel(%arg0: i32, %arg1: memref<2x8x32xf32, #tpu.memory_space<vmem>>, %arg2: memref<4x32x8xbf16, #tpu.memory_space<vmem>>, %arg3: memref<4x32x8xbf16, #tpu.memory_space<vmem>>, %arg4: memref<4x32x8xbf16, #tpu.memory_space<vmem>>, %arg5: memref<4x8x32xbf16, #tpu.memory_space<vmem>>, %arg6: memref<32x64xbf16, #tpu.memory_space<vmem>>, %arg7: memref<1x64xf32, #tpu.memory_space<vmem>>, %arg8: memref<64x32xbf16, #tpu.memory_space<vmem>>, %arg9: memref<1x32xf32, #tpu.memory_space<vmem>>, %arg10: memref<1x32xf32, #tpu.memory_space<vmem>>, %arg11: memref<1x32xf32, #tpu.memory_space<vmem>>, %arg12: memref<1x32xf32, #tpu.memory_space<vmem>>, %arg13: memref<1x32xf32, #tpu.memory_space<vmem>>, %arg14: memref<1x32xf32, #tpu.memory_space<vmem>>, %arg15: memref<1x32xf32, #tpu.memory_space<vmem>>, %arg16: memref<2x8x32xf32, #tpu.memory_space<vmem>>) attributes {dimension_semantics = [#tpu.dimension_semantics<parallel>], iteration_bounds = array<i64: 1>, scalar_prefetch = 0 : i64, scratch_operands = 0 : i64, tpu.core_type = #tpu.core_type<tc>, window_params = [{transform_indices = @transform_0, window_bounds = array<i64: 2, 8, 32>}, {pipeline_mode = #tpu.pipeline_mode<synchronous>, transform_indices = @transform_1, window_bounds = array<i64: 4, 32, 8>}, {pipeline_mode = #tpu.pipeline_mode<synchronous>, transform_indices = @transform_2, window_bounds = array<i64: 4, 32, 8>}, {pipeline_mode = #tpu.pipeline_mode<synchronous>, transform_indices = @transform_3, window_bounds = array<i64: 4, 32, 8>}, {pipeline_mode = #tpu.pipeline_mode<synchronous>, transform_indices = @transform_4, window_bounds = array<i64: 4, 8, 32>}, {pipeline_mode = #tpu.pipeline_mode<synchronous>, transform_indices = @transform_5, window_bounds = array<i64: 32, 64>}, {pipeline_mode = #tpu.pipeline_mode<synchronous>, transform_indices = @transform_6, window_bounds = array<i64: 1, 64>}, {pipeline_mode = #tpu.pipeline_mode<synchronous>, transform_indices = @transform_7, window_bounds = array<i64: 64, 32>}, {pipeline_mode = #tpu.pipeline_mode<synchronous>, transform_indices = @transform_8, window_bounds = array<i64: 1, 32>}, {pipeline_mode = #tpu.pipeline_mode<synchronous>, transform_indices = @transform_9, window_bounds = array<i64: 1, 32>}, {pipeline_mode = #tpu.pipeline_mode<synchronous>, transform_indices = @transform_10, window_bounds = array<i64: 1, 32>}, {pipeline_mode = #tpu.pipeline_mode<synchronous>, transform_indices = @transform_11, window_bounds = array<i64: 1, 32>}, {pipeline_mode = #tpu.pipeline_mode<synchronous>, transform_indices = @transform_12, window_bounds = array<i64: 1, 32>}, {pipeline_mode = #tpu.pipeline_mode<synchronous>, transform_indices = @transform_13, window_bounds = array<i64: 1, 32>}, {pipeline_mode = #tpu.pipeline_mode<synchronous>, transform_indices = @transform_14, window_bounds = array<i64: 1, 32>}, {transform_indices = @transform_15, window_bounds = array<i64: 2, 8, 32>}]} {
    %c0 = arith.constant 0 : index
    %c0_0 = arith.constant 0 : index
    %c0_1 = arith.constant 0 : index
    %0 = vector.load %arg2[%c0, %c0_0, %c0_1] : memref<4x32x8xbf16, #tpu.memory_space<vmem>>, vector<4x32x8xbf16>
    %c0_2 = arith.constant 0 : index
    %c0_3 = arith.constant 0 : index
    %c0_4 = arith.constant 0 : index
    %1 = vector.load %arg3[%c0_2, %c0_3, %c0_4] : memref<4x32x8xbf16, #tpu.memory_space<vmem>>, vector<4x32x8xbf16>
    %c0_5 = arith.constant 0 : index
    %c0_6 = arith.constant 0 : index
    %c0_7 = arith.constant 0 : index
    %2 = vector.load %arg4[%c0_5, %c0_6, %c0_7] : memref<4x32x8xbf16, #tpu.memory_space<vmem>>, vector<4x32x8xbf16>
    %c0_8 = arith.constant 0 : index
    %c0_9 = arith.constant 0 : index
    %c0_10 = arith.constant 0 : index
    %3 = vector.load %arg5[%c0_8, %c0_9, %c0_10] : memref<4x8x32xbf16, #tpu.memory_space<vmem>>, vector<4x8x32xbf16>
    %c0_11 = arith.constant 0 : index
    %c0_12 = arith.constant 0 : index
    %4 = vector.load %arg6[%c0_11, %c0_12] : memref<32x64xbf16, #tpu.memory_space<vmem>>, vector<32x64xbf16>
    %c0_13 = arith.constant 0 : index
    %c0_14 = arith.constant 0 : index
    %5 = vector.load %arg8[%c0_13, %c0_14] : memref<64x32xbf16, #tpu.memory_space<vmem>>, vector<64x32xbf16>
    %c0_15 = arith.constant 0 : index
    %c0_16 = arith.constant 0 : index
    %6 = vector.load %arg7[%c0_15, %c0_16] : memref<1x64xf32, #tpu.memory_space<vmem>>, vector<1x64xf32>
    %7 = vector.shape_cast %6 : vector<1x64xf32> to vector<1x64xf32>
    %8 = vector.broadcast %7 : vector<1x64xf32> to vector<16x64xf32>
    %c0_17 = arith.constant 0 : index
    %c0_18 = arith.constant 0 : index
    %9 = vector.load %arg9[%c0_17, %c0_18] : memref<1x32xf32, #tpu.memory_space<vmem>>, vector<1x32xf32>
    %10 = vector.shape_cast %9 : vector<1x32xf32> to vector<1x32xf32>
    %11 = vector.broadcast %10 : vector<1x32xf32> to vector<16x32xf32>
    %c0_19 = arith.constant 0 : index
    %c0_20 = arith.constant 0 : index
    %12 = vector.load %arg10[%c0_19, %c0_20] : memref<1x32xf32, #tpu.memory_space<vmem>>, vector<1x32xf32>
    %13 = vector.shape_cast %12 : vector<1x32xf32> to vector<1x32xf32>
    %14 = vector.broadcast %13 : vector<1x32xf32> to vector<16x32xf32>
    %c0_21 = arith.constant 0 : index
    %c0_22 = arith.constant 0 : index
    %15 = vector.load %arg11[%c0_21, %c0_22] : memref<1x32xf32, #tpu.memory_space<vmem>>, vector<1x32xf32>
    %16 = vector.shape_cast %15 : vector<1x32xf32> to vector<1x32xf32>
    %17 = vector.broadcast %16 : vector<1x32xf32> to vector<16x32xf32>
    %c0_23 = arith.constant 0 : index
    %c0_24 = arith.constant 0 : index
    %18 = vector.load %arg12[%c0_23, %c0_24] : memref<1x32xf32, #tpu.memory_space<vmem>>, vector<1x32xf32>
    %19 = vector.shape_cast %18 : vector<1x32xf32> to vector<1x32xf32>
    %20 = vector.broadcast %19 : vector<1x32xf32> to vector<16x32xf32>
    %c0_25 = arith.constant 0 : index
    %c0_26 = arith.constant 0 : index
    %21 = vector.load %arg13[%c0_25, %c0_26] : memref<1x32xf32, #tpu.memory_space<vmem>>, vector<1x32xf32>
    %22 = vector.shape_cast %21 : vector<1x32xf32> to vector<1x32xf32>
    %23 = vector.broadcast %22 : vector<1x32xf32> to vector<16x32xf32>
    %c0_27 = arith.constant 0 : index
    %c0_28 = arith.constant 0 : index
    %24 = vector.load %arg14[%c0_27, %c0_28] : memref<1x32xf32, #tpu.memory_space<vmem>>, vector<1x32xf32>
    %25 = vector.shape_cast %24 : vector<1x32xf32> to vector<1x32xf32>
    %26 = vector.broadcast %25 : vector<1x32xf32> to vector<16x32xf32>
    %c0_29 = arith.constant 0 : index
    %c0_30 = arith.constant 0 : index
    %27 = vector.load %arg15[%c0_29, %c0_30] : memref<1x32xf32, #tpu.memory_space<vmem>>, vector<1x32xf32>
    %28 = vector.shape_cast %27 : vector<1x32xf32> to vector<1x32xf32>
    %29 = vector.broadcast %28 : vector<1x32xf32> to vector<16x32xf32>
    %c0_31 = arith.constant 0 : index
    %c0_32 = arith.constant 0 : index
    %c0_33 = arith.constant 0 : index
    %30 = vector.load %arg1[%c0_31, %c0_32, %c0_33] : memref<2x8x32xf32, #tpu.memory_space<vmem>>, vector<2x8x32xf32>
    %31 = vector.shape_cast %30 : vector<2x8x32xf32> to vector<16x32xf32>
    %cst = arith.constant dense<0.000000e+00> : vector<16xf32>
    %32 = vector.multi_reduction <add>, %31, %cst [1] : vector<16x32xf32> to vector<16xf32>
    %33 = vector.shape_cast %32 : vector<16xf32> to vector<16x1xf32>
    %cst_34 = arith.constant 3.200000e+01 : f32
    %34 = vector.broadcast %cst_34 : f32 to vector<16x1xf32>
    %35 = arith.divf %33, %34 : vector<16x1xf32>
    %36 = arith.mulf %31, %31 : vector<16x32xf32>
    %cst_35 = arith.constant dense<0.000000e+00> : vector<16xf32>
    %37 = vector.multi_reduction <add>, %36, %cst_35 [1] : vector<16x32xf32> to vector<16xf32>
    %38 = vector.shape_cast %37 : vector<16xf32> to vector<16x1xf32>
    %cst_36 = arith.constant 3.200000e+01 : f32
    %39 = vector.broadcast %cst_36 : f32 to vector<16x1xf32>
    %40 = arith.divf %38, %39 : vector<16x1xf32>
    %41 = arith.mulf %35, %35 : vector<16x1xf32>
    %42 = arith.subf %40, %41 : vector<16x1xf32>
    %43 = vector.broadcast %35 : vector<16x1xf32> to vector<16x32xf32>
    %44 = arith.subf %31, %43 : vector<16x32xf32>
    %cst_37 = arith.constant 9.99999997E-7 : f32
    %45 = vector.broadcast %cst_37 : f32 to vector<16x1xf32>
    %46 = arith.addf %42, %45 : vector<16x1xf32>
    %47 = math.rsqrt %46 : vector<16x1xf32>
    %48 = vector.broadcast %47 : vector<16x1xf32> to vector<16x32xf32>
    %49 = arith.mulf %44, %48 : vector<16x32xf32>
    %50 = arith.mulf %49, %14 : vector<16x32xf32>
    %51 = arith.addf %50, %17 : vector<16x32xf32>
    %cst_38 = arith.constant 0.353553385 : f32
    %c0_i32 = arith.constant 0 : i32
    %c2_i32 = arith.constant 2 : i32
    %52 = arith.addi %c0_i32, %c2_i32 : i32
    %c1_i32 = arith.constant 1 : i32
    %53 = scf.for %arg17 = %c0_i32 to %52 step %c1_i32 iter_args(%arg18 = %51) -> (vector<16x32xf32>)  : i32 {
      %56 = arith.truncf %arg18 : vector<16x32xf32> to vector<16x32xbf16>
      %57 = vector.shape_cast %56 : vector<16x32xbf16> to vector<1x16x32xbf16>
      %58 = vector.shape_cast %57 : vector<1x16x32xbf16> to vector<1x16x32xbf16>
      %59 = vector.broadcast %58 : vector<1x16x32xbf16> to vector<4x16x32xbf16>
      %cst_42 = arith.constant dense<0.000000e+00> : vector<4x16x8xf32>
      %60 = tpu.matmul %59, %0, %cst_42 {dimension_numbers = #tpu.dot_dimension_numbers<[2], [1], [1], [2], [0, 0, 0, 1, 1, 2], [0], [0]>} : vector<4x16x32xbf16>, vector<4x32x8xbf16>, vector<4x16x8xf32> -> vector<4x16x8xf32>
      %61 = arith.truncf %60 : vector<4x16x8xf32> to vector<4x16x8xbf16>
      %cst_43 = arith.constant dense<0.000000e+00> : vector<4x16x8xf32>
      %62 = tpu.matmul %59, %1, %cst_43 {dimension_numbers = #tpu.dot_dimension_numbers<[2], [1], [1], [2], [0, 0, 0, 1, 1, 2], [0], [0]>} : vector<4x16x32xbf16>, vector<4x32x8xbf16>, vector<4x16x8xf32> -> vector<4x16x8xf32>
      %63 = arith.truncf %62 : vector<4x16x8xf32> to vector<4x16x8xbf16>
      %cst_44 = arith.constant dense<0.000000e+00> : vector<4x16x8xf32>
      %64 = tpu.matmul %59, %2, %cst_44 {dimension_numbers = #tpu.dot_dimension_numbers<[2], [1], [1], [2], [0, 0, 0, 1, 1, 2], [0], [0]>} : vector<4x16x32xbf16>, vector<4x32x8xbf16>, vector<4x16x8xf32> -> vector<4x16x8xf32>
      %65 = arith.truncf %64 : vector<4x16x8xf32> to vector<4x16x8xbf16>
      %66 = vector.shape_cast %61 : vector<4x16x8xbf16> to vector<8x8x8xbf16>
      %67 = vector.shape_cast %63 : vector<4x16x8xbf16> to vector<8x8x8xbf16>
      %68 = vector.shape_cast %65 : vector<4x16x8xbf16> to vector<8x8x8xbf16>
      "tpu.trace_start"() <{level = 10 : i32, message = "bqd,bkd->bqk"}> : () -> ()
      %cst_45 = arith.constant dense<0.000000e+00> : vector<8x8x8xf32>
      %69 = tpu.matmul %66, %67, %cst_45 {dimension_numbers = #tpu.dot_dimension_numbers<[2], [2], [1], [1], [0, 0, 0, 1, 1, 1], [0], [0]>} : vector<8x8x8xbf16>, vector<8x8x8xbf16>, vector<8x8x8xf32> -> vector<8x8x8xf32>
      "tpu.trace_stop"() : () -> ()
      %70 = vector.broadcast %cst_38 : f32 to vector<8x8x8xf32>
      %71 = arith.mulf %69, %70 : vector<8x8x8xf32>
      %cst_46 = arith.constant dense<0xFF800000> : vector<8x8xf32>
      %72 = vector.multi_reduction <maximumf>, %71, %cst_46 [2] : vector<8x8x8xf32> to vector<8x8xf32>
      %73 = vector.shape_cast %72 : vector<8x8xf32> to vector<8x8x1xf32>
      %74 = vector.broadcast %73 : vector<8x8x1xf32> to vector<8x8x8xf32>
      %75 = arith.subf %71, %74 : vector<8x8x8xf32>
      %76 = math.exp %75 : vector<8x8x8xf32>
      %cst_47 = arith.constant dense<0.000000e+00> : vector<8x8xf32>
      %77 = vector.multi_reduction <add>, %76, %cst_47 [2] : vector<8x8x8xf32> to vector<8x8xf32>
      %78 = vector.shape_cast %77 : vector<8x8xf32> to vector<8x8x1xf32>
      %79 = tpu.reciprocal %78 {approx = true} : vector<8x8x1xf32> -> vector<8x8x1xf32>
      %80 = vector.broadcast %79 : vector<8x8x1xf32> to vector<8x8x8xf32>
      %81 = arith.mulf %76, %80 : vector<8x8x8xf32>
      %82 = arith.truncf %81 : vector<8x8x8xf32> to vector<8x8x8xbf16>
      "tpu.trace_start"() <{level = 10 : i32, message = "bqk,bkd->bqd"}> : () -> ()
      %cst_48 = arith.constant dense<0.000000e+00> : vector<8x8x8xf32>
      %83 = tpu.matmul %82, %68, %cst_48 {dimension_numbers = #tpu.dot_dimension_numbers<[2], [1], [1], [2], [0, 0, 0, 1, 1, 2], [0], [0]>} : vector<8x8x8xbf16>, vector<8x8x8xbf16>, vector<8x8x8xf32> -> vector<8x8x8xf32>
      "tpu.trace_stop"() : () -> ()
      %84 = vector.shape_cast %83 : vector<8x8x8xf32> to vector<4x16x8xf32>
      %85 = arith.truncf %84 : vector<4x16x8xf32> to vector<4x16x8xbf16>
      %cst_49 = arith.constant dense<0.000000e+00> : vector<4x16x32xf32>
      %86 = tpu.matmul %85, %3, %cst_49 {dimension_numbers = #tpu.dot_dimension_numbers<[2], [1], [1], [2], [0, 0, 0, 1, 1, 2], [0], [0]>} : vector<4x16x8xbf16>, vector<4x8x32xbf16>, vector<4x16x32xf32> -> vector<4x16x32xf32>
      %cst_50 = arith.constant dense<0.000000e+00> : vector<16x32xf32>
      %87 = vector.multi_reduction <add>, %86, %cst_50 [0] : vector<4x16x32xf32> to vector<16x32xf32>
      %88 = arith.addf %arg18, %87 : vector<16x32xf32>
      %cst_51 = arith.constant dense<0.000000e+00> : vector<16xf32>
      %89 = vector.multi_reduction <add>, %88, %cst_51 [1] : vector<16x32xf32> to vector<16xf32>
      %90 = vector.shape_cast %89 : vector<16xf32> to vector<16x1xf32>
      %cst_52 = arith.constant 3.200000e+01 : f32
      %91 = vector.broadcast %cst_52 : f32 to vector<16x1xf32>
      %92 = arith.divf %90, %91 : vector<16x1xf32>
      %93 = arith.mulf %88, %88 : vector<16x32xf32>
      %cst_53 = arith.constant dense<0.000000e+00> : vector<16xf32>
      %94 = vector.multi_reduction <add>, %93, %cst_53 [1] : vector<16x32xf32> to vector<16xf32>
      %95 = vector.shape_cast %94 : vector<16xf32> to vector<16x1xf32>
      %cst_54 = arith.constant 3.200000e+01 : f32
      %96 = vector.broadcast %cst_54 : f32 to vector<16x1xf32>
      %97 = arith.divf %95, %96 : vector<16x1xf32>
      %98 = arith.mulf %92, %92 : vector<16x1xf32>
      %99 = arith.subf %97, %98 : vector<16x1xf32>
      %100 = vector.broadcast %92 : vector<16x1xf32> to vector<16x32xf32>
      %101 = arith.subf %88, %100 : vector<16x32xf32>
      %cst_55 = arith.constant 9.99999997E-7 : f32
      %102 = vector.broadcast %cst_55 : f32 to vector<16x1xf32>
      %103 = arith.addf %99, %102 : vector<16x1xf32>
      %104 = math.rsqrt %103 : vector<16x1xf32>
      %105 = vector.broadcast %104 : vector<16x1xf32> to vector<16x32xf32>
      %106 = arith.mulf %101, %105 : vector<16x32xf32>
      %107 = arith.mulf %106, %20 : vector<16x32xf32>
      %108 = arith.addf %107, %23 : vector<16x32xf32>
      %109 = arith.truncf %108 : vector<16x32xf32> to vector<16x32xbf16>
      %cst_56 = arith.constant dense<0.000000e+00> : vector<16x64xf32>
      %110 = tpu.matmul %109, %4, %cst_56 {dimension_numbers = #tpu.dot_dimension_numbers<[1], [0], [0], [1], [0, 0, 1, 1], [], []>} : vector<16x32xbf16>, vector<32x64xbf16>, vector<16x64xf32> -> vector<16x64xf32>
      %111 = arith.addf %110, %8 : vector<16x64xf32>
      %cst_57 = arith.constant 0.000000e+00 : f32
      %112 = vector.broadcast %cst_57 : f32 to vector<16x64xf32>
      %113 = arith.maximumf %111, %112 : vector<16x64xf32>
      %114 = arith.truncf %113 : vector<16x64xf32> to vector<16x64xbf16>
      %cst_58 = arith.constant dense<0.000000e+00> : vector<16x32xf32>
      %115 = tpu.matmul %114, %5, %cst_58 {dimension_numbers = #tpu.dot_dimension_numbers<[1], [0], [0], [1], [0, 0, 1, 1], [], []>} : vector<16x64xbf16>, vector<64x32xbf16>, vector<16x32xf32> -> vector<16x32xf32>
      %116 = arith.addf %115, %11 : vector<16x32xf32>
      %117 = arith.addf %108, %116 : vector<16x32xf32>
      %cst_59 = arith.constant dense<0.000000e+00> : vector<16xf32>
      %118 = vector.multi_reduction <add>, %117, %cst_59 [1] : vector<16x32xf32> to vector<16xf32>
      %119 = vector.shape_cast %118 : vector<16xf32> to vector<16x1xf32>
      %cst_60 = arith.constant 3.200000e+01 : f32
      %120 = vector.broadcast %cst_60 : f32 to vector<16x1xf32>
      %121 = arith.divf %119, %120 : vector<16x1xf32>
      %122 = arith.mulf %117, %117 : vector<16x32xf32>
      %cst_61 = arith.constant dense<0.000000e+00> : vector<16xf32>
      %123 = vector.multi_reduction <add>, %122, %cst_61 [1] : vector<16x32xf32> to vector<16xf32>
      %124 = vector.shape_cast %123 : vector<16xf32> to vector<16x1xf32>
      %cst_62 = arith.constant 3.200000e+01 : f32
      %125 = vector.broadcast %cst_62 : f32 to vector<16x1xf32>
      %126 = arith.divf %124, %125 : vector<16x1xf32>
      %127 = arith.mulf %121, %121 : vector<16x1xf32>
      %128 = arith.subf %126, %127 : vector<16x1xf32>
      %129 = vector.broadcast %121 : vector<16x1xf32> to vector<16x32xf32>
      %130 = arith.subf %117, %129 : vector<16x32xf32>
      %cst_63 = arith.constant 9.99999997E-7 : f32
      %131 = vector.broadcast %cst_63 : f32 to vector<16x1xf32>
      %132 = arith.addf %128, %131 : vector<16x1xf32>
      %133 = math.rsqrt %132 : vector<16x1xf32>
      %134 = vector.broadcast %133 : vector<16x1xf32> to vector<16x32xf32>
      %135 = arith.mulf %130, %134 : vector<16x32xf32>
      %136 = arith.mulf %135, %26 : vector<16x32xf32>
      %137 = arith.addf %136, %29 : vector<16x32xf32>
      scf.yield %137 : vector<16x32xf32>
    }
    %54 = vector.shape_cast %53 : vector<16x32xf32> to vector<2x8x32xf32>
    %c0_39 = arith.constant 0 : index
    %c0_40 = arith.constant 0 : index
    %c0_41 = arith.constant 0 : index
    %55 = vector.load %arg16[%c0_39, %c0_40, %c0_41] : memref<2x8x32xf32, #tpu.memory_space<vmem>>, vector<2x8x32xf32>
    tpu.vector_store %arg16[%c0_39, %c0_40, %c0_41], %54 {strides = array<i32>} : memref<2x8x32xf32, #tpu.memory_space<vmem>>, vector<2x8x32xf32>,
    return
  }
  func.func @transform_0(%arg0: i32) -> (i32, i32, i32) {
    %c0_i32 = arith.constant 0 : i32
    %c0_i32_0 = arith.constant 0 : i32
    %c0_i32_1 = arith.constant 0 : i32
    return %arg0, %c0_i32, %c0_i32_0 : i32, i32, i32
  }
  func.func @transform_1(%arg0: i32) -> (i32, i32, i32) {
    %c0_i32 = arith.constant 0 : i32
    %c0_i32_0 = arith.constant 0 : i32
    %c0_i32_1 = arith.constant 0 : i32
    %c0_i32_2 = arith.constant 0 : i32
    return %c0_i32, %c0_i32_0, %c0_i32_1 : i32, i32, i32
  }
  func.func @transform_2(%arg0: i32) -> (i32, i32, i32) {
    %c0_i32 = arith.constant 0 : i32
    %c0_i32_0 = arith.constant 0 : i32
    %c0_i32_1 = arith.constant 0 : i32
    %c0_i32_2 = arith.constant 0 : i32
    return %c0_i32, %c0_i32_0, %c0_i32_1 : i32, i32, i32
  }
  func.func @transform_3(%arg0: i32) -> (i32, i32, i32) {
    %c0_i32 = arith.constant 0 : i32
    %c0_i32_0 = arith.constant 0 : i32
    %c0_i32_1 = arith.constant 0 : i32
    %c0_i32_2 = arith.constant 0 : i32
    return %c0_i32, %c0_i32_0, %c0_i32_1 : i32, i32, i32
  }
  func.func @transform_4(%arg0: i32) -> (i32, i32, i32) {
    %c0_i32 = arith.constant 0 : i32
    %c0_i32_0 = arith.constant 0 : i32
    %c0_i32_1 = arith.constant 0 : i32
    %c0_i32_2 = arith.constant 0 : i32
    return %c0_i32, %c0_i32_0, %c0_i32_1 : i32, i32, i32
  }
  func.func @transform_5(%arg0: i32) -> (i32, i32) {
    %c0_i32 = arith.constant 0 : i32
    %c0_i32_0 = arith.constant 0 : i32
    %c0_i32_1 = arith.constant 0 : i32
    return %c0_i32, %c0_i32_0 : i32, i32
  }
  func.func @transform_6(%arg0: i32) -> (i32, i32) {
    %c0_i32 = arith.constant 0 : i32
    %c0_i32_0 = arith.constant 0 : i32
    %c0_i32_1 = arith.constant 0 : i32
    return %c0_i32, %c0_i32_0 : i32, i32
  }
  func.func @transform_7(%arg0: i32) -> (i32, i32) {
    %c0_i32 = arith.constant 0 : i32
    %c0_i32_0 = arith.constant 0 : i32
    %c0_i32_1 = arith.constant 0 : i32
    return %c0_i32, %c0_i32_0 : i32, i32
  }
  func.func @transform_8(%arg0: i32) -> (i32, i32) {
    %c0_i32 = arith.constant 0 : i32
    %c0_i32_0 = arith.constant 0 : i32
    %c0_i32_1 = arith.constant 0 : i32
    return %c0_i32, %c0_i32_0 : i32, i32
  }
  func.func @transform_9(%arg0: i32) -> (i32, i32) {
    %c0_i32 = arith.constant 0 : i32
    %c0_i32_0 = arith.constant 0 : i32
    %c0_i32_1 = arith.constant 0 : i32
    return %c0_i32, %c0_i32_0 : i32, i32
  }
  func.func @transform_10(%arg0: i32) -> (i32, i32) {
    %c0_i32 = arith.constant 0 : i32
    %c0_i32_0 = arith.constant 0 : i32
    %c0_i32_1 = arith.constant 0 : i32
    return %c0_i32, %c0_i32_0 : i32, i32
  }
  func.func @transform_11(%arg0: i32) -> (i32, i32) {
    %c0_i32 = arith.constant 0 : i32
    %c0_i32_0 = arith.constant 0 : i32
    %c0_i32_1 = arith.constant 0 : i32
    return %c0_i32, %c0_i32_0 : i32, i32
  }
  func.func @transform_12(%arg0: i32) -> (i32, i32) {
    %c0_i32 = arith.constant 0 : i32
    %c0_i32_0 = arith.constant 0 : i32
    %c0_i32_1 = arith.constant 0 : i32
    return %c0_i32, %c0_i32_0 : i32, i32
  }
  func.func @transform_13(%arg0: i32) -> (i32, i32) {
    %c0_i32 = arith.constant 0 : i32
    %c0_i32_0 = arith.constant 0 : i32
    %c0_i32_1 = arith.constant 0 : i32
    return %c0_i32, %c0_i32_0 : i32, i32
  }
  func.func @transform_14(%arg0: i32) -> (i32, i32) {
    %c0_i32 = arith.constant 0 : i32
    %c0_i32_0 = arith.constant 0 : i32
    %c0_i32_1 = arith.constant 0 : i32
    return %c0_i32, %c0_i32_0 : i32, i32
  }
  func.func @transform_15(%arg0: i32) -> (i32, i32, i32) {
    %c0_i32 = arith.constant 0 : i32
    %c0_i32_0 = arith.constant 0 : i32
    %c0_i32_1 = arith.constant 0 : i32
    return %arg0, %c0_i32, %c0_i32_0 : i32, i32, i32
  }
}

</mosaic_0001>

<bundles_post_ra>
// kernel: tpu_custom_call.1
= control target key start
LH: loop header
LB: loop body
LE: loop exit
PB: predicated region body
PF: predicated region fallthrough
CT: control target
= control target key end

     0   :  { %vm150_vm0 = vcmask 261120   ;;  %s2317_s0 = inlined_call_operand.vmem [shape: f32[2,8,32], index: 0, kind: input, shape index: {}]   ;;  %s2318_s1 = inlined_call_operand.vmem [shape: bf16[4,32,8], index: 1, kind: input, shape index: {}]   ;;  %s2319_s2 = inlined_call_operand.vmem [shape: bf16[4,32,8], index: 2, kind: input, shape index: {}]   ;;  %s2320_s3 = inlined_call_operand.vmem [shape: bf16[4,32,8], index: 3, kind: input, shape index: {}]   ;;  %s2321_s4 = inlined_call_operand.vmem [shape: bf16[4,8,32], index: 4, kind: input, shape index: {}]   ;;  %s2322_s5 = inlined_call_operand.vmem [shape: bf16[32,64], index: 5, kind: input, shape index: {}]   ;;  %s2323_s6 = inlined_call_operand.vmem [shape: f32[1,64], index: 6, kind: input, shape index: {}]   ;;  %s2324_s7 = inlined_call_operand.vmem [shape: bf16[64,32], index: 7, kind: input, shape index: {}]   ;;  %s2325_s8 = inlined_call_operand.vmem [shape: f32[1,32], index: 8, kind: input, shape index: {}]   ;;  %s2326_s9 = inlined_call_operand.vmem [shape: f32[1,32], index: 9, kind: input, shape index: {}]   ;;  %s2327_s10 = inlined_call_operand.vmem [shape: f32[1,32], index: 10, kind: input, shape index: {}]   ;;  %s2328_s11 = inlined_call_operand.vmem [shape: f32[1,32], index: 11, kind: input, shape index: {}]   ;;  %s2329_s12 = inlined_call_operand.vmem [shape: f32[1,32], index: 12, kind: input, shape index: {}]   ;;  %s2330_s13 = inlined_call_operand.vmem [shape: f32[1,32], index: 13, kind: input, shape index: {}]   ;;  %s2331_s14 = inlined_call_operand.vmem [shape: f32[1,32], index: 14, kind: input, shape index: {}]   ;;  %s2332_s15 = inlined_call_operand.hbm [shape: f32[2,8,32], index: 15, kind: output, shape index: {}]  }
   0x1   :  { %v1713_v0 = vld [vmem:[%s2317_s0] sm:$0xff]  ;;  %v1722_v3 = vld [vmem:[%s2317_s0 + $0x8] sm:$0xff] }
   0x2   :  { %v151_v1 = vsel %vm150_vm0, %v1713_v0, 0.0  ;;  %v166_v2 = vmul.f32 %v1713_v0, %v1713_v0 }
   0x3   :  { %20 = vsyncpa [#allocation3], 0  ;;  %152 = vadd.xlane.f32.xlu0 %v151_v1  ;;  %v167_v5 = vmul.f32 %v1722_v3, %v1722_v3  ;;  %v154_v6 = vsel %vm150_vm0, %v1722_v3, 0.0  ;;  %v1626_v8 = vmov 32.0   ;;  %v1743_v22 = vld [vmem:[%s2318_s1] sm:$0xf] }
   0x4   :  { %v168_v4 = vsel %vm150_vm0, %v166_v2, 0.0  ;;  %1530 = vrcp.f32 %v1626_v8  ;;  %2339 = vst [vmem:[#allocation6_spill] sm:$0xff] %v1743_v22  ;;  %v1748_v23 = vld [vmem:[%s2318_s1] sm:$0xf0]  ;;  %v1753_v25 = vld [vmem:[%s2318_s1 + $0x8] sm:$0xf] }
   0x5   :  { %169 = vadd.xlane.f32.xlu1 %v168_v4  ;;  %v171_v7 = vsel %vm150_vm0, %v167_v5, 0.0  ;;  %2340 = vst [vmem:[#allocation7_spill] sm:$0xff] %v1748_v23  ;;  %v1758_v26 = vld [vmem:[%s2318_s1 + $0x8] sm:$0xf0]  ;;  %v1763_v27 = vld [vmem:[%s2318_s1 + $0x10] sm:$0xf] }
   0x6   :  { %2341 = vst [vmem:[#allocation8_spill] sm:$0xff] %v1753_v25  ;;  %v1772_v29 = vld [vmem:[%s2318_s1 + $0x10] sm:$0xf0]  ;;  %v1777_v30 = vld [vmem:[%s2318_s1 + $0x18] sm:$0xf] }
   0x7   :  { %2342 = vst [vmem:[#allocation9_spill] sm:$0xff] %v1758_v26  ;;  %v1782_v31 = vld [vmem:[%s2318_s1 + $0x18] sm:$0xf0]  ;;  %v1787_v33 = vld [vmem:[%s2318_s1 + $0x20] sm:$0xf] }
   0x8   :  { %v1792_v34 = vld [vmem:[%s2318_s1 + $0x20] sm:$0xf0]  ;;  %v1797_v35 = vld [vmem:[%s2318_s1 + $0x28] sm:$0xf]  ;;  %v1805_v38 = vld [vmem:[%s2318_s1 + $0x28] sm:$0xf0] }
   0x9   :  { %v1810_v39 = vld [vmem:[%s2318_s1 + $0x30] sm:$0xf]  ;;  %v1815_v40 = vld [vmem:[%s2318_s1 + $0x30] sm:$0xf0]  ;;  %v1820_v41 = vld [vmem:[%s2318_s1 + $0x38] sm:$0xf] }
   0xa   :  { %v1531_v9 = vpop.eup %1530  ;;  %v1825_v42 = vld [vmem:[%s2318_s1 + $0x38] sm:$0xf0]  ;;  %v1830_v43 = vld [vmem:[%s2319_s2] sm:$0xf]  ;;  %v1835_v45 = vld [vmem:[%s2319_s2] sm:$0xf0] }
   0xb   :  { %155 = vadd.xlane.f32.xlu0 %v154_v6  ;;  %v158_v10 = vmul.f32 32.0, %v1531_v9  ;;  %vm162_vm1 = vweird.f32 %v1531_v9  ;;  %v1840_v46 = vld [vmem:[%s2319_s2 + $0x8] sm:$0xf]  ;;  %v1845_v47 = vld [vmem:[%s2319_s2 + $0x8] sm:$0xf0] }
   0xc   :  { %v1850_v48 = vld [vmem:[%s2319_s2 + $0x10] sm:$0xf]  ;;  %v1855_v49 = vld [vmem:[%s2319_s2 + $0x10] sm:$0xf0]  ;;  %v1860_v50 = vld [vmem:[%s2319_s2 + $0x18] sm:$0xf] }
   0xd   :  { %172 = vadd.xlane.f32.xlu1 %v171_v7  ;;  %v159_v11 = vsub.f32 1.0, %v158_v10  ;;  %v1867_v53 = vld [vmem:[%s2319_s2 + $0x18] sm:$0xf0]  ;;  %v1872_v54 = vld [vmem:[%s2319_s2 + $0x20] sm:$0xf] }
   0xe   :  { %v1878_v56 = vld [vmem:[%s2319_s2 + $0x20] sm:$0xf0]  ;;  %v1883_v57 = vld [vmem:[%s2319_s2 + $0x28] sm:$0xf]  ;;  %v1888_v58 = vld [vmem:[%s2319_s2 + $0x28] sm:$0xf0] }
   0xf   :  { %v160_v12 = vmul.f32 %v1531_v9, %v159_v11  ;;  %v1894_v59 = vld [vmem:[%s2319_s2 + $0x30] sm:$0xf]  ;;  %v1899_v60 = vld [vmem:[%s2319_s2 + $0x30] sm:$0xf0]  ;;  %v1904_v62 = vld [vmem:[%s2319_s2 + $0x38] sm:$0xf] }
  0x10   :  { %v1909_v63 = vld [vmem:[%s2319_s2 + $0x38] sm:$0xf0]  ;;  %v1914_v1 = vld [vmem:[%s2320_s3] sm:$0xf]  ;;  %v1919_v2 = vld [vmem:[%s2320_s3] sm:$0xf0] }
  0x11   :  { %v161_v13 = vadd.f32 %v1531_v9, %v160_v12  ;;  %2343 = vst [vmem:[#allocation10_spill] sm:$0xff] %v1914_v1  ;;  %v1924_v4 = vld [vmem:[%s2320_s3 + $0x8] sm:$0xf]  ;;  %v1929_v5 = vld [vmem:[%s2320_s3 + $0x8] sm:$0xf0] }
  0x12   :  { %2344 = vst [vmem:[#allocation11_spill] sm:$0xff] %v1919_v2  ;;  %v1934_v7 = vld [vmem:[%s2320_s3 + $0x10] sm:$0xf]  ;;  %v1939_v8 = vld [vmem:[%s2320_s3 + $0x10] sm:$0xf0] }
  0x13   :  { %v1730_v14 = vsel %vm162_vm1, %v1531_v9, %v161_v13  ;;  %2345 = vst [vmem:[#allocation12_spill] sm:$0xff] %v1924_v4  ;;  %v1944_v9 = vld [vmem:[%s2320_s3 + $0x18] sm:$0xf]  ;;  %v1949_v10 = vld [vmem:[%s2320_s3 + $0x18] sm:$0xf0] }
  0x14   :  { %2338 = vst [vmem:[#allocation5_spill] sm:$0xff] %v1730_v14  ;;  %v1954_v11 = vld [vmem:[%s2320_s3 + $0x20] sm:$0xf]  ;;  %v1959_v13 = vld [vmem:[%s2320_s3 + $0x20] sm:$0xf0] }
  0x15   :  { %2346 = vst [vmem:[#allocation13_spill] sm:$0xff] %v1929_v5 }
  0x16   :  { %2347 = vst [vmem:[#allocation14_spill] sm:$0xff] %v1934_v7 }
  0x17   :  { %2348 = vst [vmem:[#allocation15_spill] sm:$0xff] %v1939_v8 }
  0x18   :  { %2349 = vst [vmem:[#allocation16_spill] sm:$0xff] %v1944_v9 }
  0x19   :  { %2350 = vst [vmem:[#allocation17_spill] sm:$0xff] %v1949_v10 }
  0x1a   :  { %2351 = vst [vmem:[#allocation18_spill] sm:$0xff] %v1954_v11 }
  0x1b   :  { %2352 = vst [vmem:[#allocation19_spill] sm:$0xff] %v1959_v13 }
  0x76   :  { %v153_v15 = vpop.xlane.xlu0 %152 }
  0x77   :  { %v1733_v16 = vmul.f32 %v1730_v14, %v153_v15  ;;  %v1964_v15 = vld [vmem:[%s2320_s3 + $0x28] sm:$0xf] }
  0x78   :  { %v170_v17 = vpop.xlane.xlu1 %169  ;;  %2353 = vst [vmem:[#allocation20_spill] sm:$0xff] %v1964_v15 }
  0x79   :  { %v176_v18 = vmul.f32 %v1733_v16, %v1733_v16  ;;  %v174_v19 = vmul.f32 %v170_v17, %v1730_v14 }
  0x7b   :  { %v178_v20 = vsub.f32 %v174_v19, %v176_v18  ;;  %v1522_v18 = vld [vmem:[%s2326_s9] ss:$0 sm:$0xff]  ;;  %v1972_v19 = vld [vmem:[%s2320_s3 + $0x28] sm:$0xf0] }
  0x7d   :  { %v1738_v21 = vadd.f32 1e-06, %v178_v20  ;;  %v1977_v20 = vld [vmem:[%s2320_s3 + $0x30] sm:$0xf] }
  0x7e   :  { %v156_v24 = vpop.xlane.xlu0 %155 }
  0x7f   :  { %1532 = vrsqrt.f32 %v1738_v21  ;;  %v1767_v28 = vmul.f32 %v1730_v14, %v156_v24  ;;  %v1982_v24 = vld [vmem:[%s2320_s3 + $0x30] sm:$0xf0]  ;;  %vm190_vm3 = vweird.f32 %v1738_v21 }
  0x80   :  { %v173_v32 = vpop.xlane.xlu1 %172 }
  0x81   :  { %v177_v36 = vmul.f32 %v1767_v28, %v1767_v28  ;;  %v175_v37 = vmul.f32 %v173_v32, %v1730_v14 }
  0x83   :  { %v179_v44 = vsub.f32 %v175_v37, %v177_v36  ;;  %v1989_v37 = vld [vmem:[%s2320_s3 + $0x38] sm:$0xf] }
  0x85   :  { %v1533_v51 = vpop.eup %1532  ;;  %v1862_v52 = vadd.f32 1e-06, %v179_v44  ;;  %v1994_v44 = vld [vmem:[%s2320_s3 + $0x38] sm:$0xf0] }
  0x86   :  { %v185_v55 = vmul.f32 %v1533_v51, %v1738_v21  ;;  %vm191_vm2 = vweird.f32 %v1533_v51  ;;  %v180_v21 = vsub.f32 %v1713_v0, %v1733_v16  ;;  %v2020_v0 = vld [vmem:[%s2321_s4 + $0xc] sm:$0xf]  ;;  %v2025_v16 = vld [vmem:[%s2322_s5] sm:$0xf] }
  0x87   :  { %1534 = vrsqrt.f32 %v1862_v52  ;;  %vm192_vm4 = vmor %vm190_vm3, %vm191_vm2  ;;  %2356 = vst [vmem:[#allocation23_spill] sm:$0xff] %v2020_v0  ;;  %vm200_vm6 = vweird.f32 %v1862_v52 }
  0x88   :  { %v186_v61 = vmul.f32 %v1533_v51, %v185_v55  ;;  %v1999_v55 = vld [vmem:[%s2321_s4] sm:$0xf]  ;;  %2357 = vst [vmem:[#allocation24_spill] sm:$0xff] %v2025_v16 }
  0x89   :  { %2354 = vst [vmem:[#allocation21_spill] sm:$0xff] %v1999_v55 }
  0x8a   :  { %v187_v6 = vmul.f32 0.5, %v186_v61  ;;  %v1523_v61 = vld [vmem:[%s2327_s10] ss:$0 sm:$0xff] }
  0x8c   :  { %v188_v12 = vsub.f32 1.5, %v187_v6  ;;  %v2010_v6 = vld [vmem:[%s2321_s4 + $0x4] sm:$0xf] }
  0x8d   :  { %v1535_v17 = vpop.eup %1534  ;;  %2355 = vst [vmem:[#allocation22_spill] sm:$0xff] %v2010_v6  ;;  %v2030_v6 = vld [vmem:[%s2322_s5] sm:$0xf0] }
  0x8e   :  { %v189_v32 = vmul.f32 %v1533_v51, %v188_v12  ;;  %v195_v36 = vmul.f32 %v1535_v17, %v1862_v52  ;;  %v2015_v12 = vld [vmem:[%s2321_s4 + $0x8] sm:$0xf]  ;;  %2358 = vst [vmem:[#allocation25_spill] sm:$0xff] %v2030_v6  ;;  %vm201_vm5 = vweird.f32 %v1535_v17 }
  0x8f   :  { %vm202_vm7 = vmor %vm200_vm6, %vm201_vm5 }
  0x90   :  { %v193_v14 = vsel %vm192_vm4, %v1533_v51, %v189_v32  ;;  %v196_v55 = vmul.f32 %v1535_v17, %v195_v36  ;;  %v2035_v51 = vld [vmem:[%s2322_s5 + $0x8] sm:$0xf]  ;;  %v2040_v32 = vld [vmem:[%s2322_s5 + $0x8] sm:$0xf0]  ;;  %v2045_v36 = vld [vmem:[%s2324_s7] sm:$0xf] }
  0x91   :  { %v204_v8 = vmul.f32 %v193_v14, %v180_v21  ;;  %2359 = vst [vmem:[#allocation26_spill] sm:$0xff] %v2035_v51  ;;  %v2050_v14 = vld [vmem:[%s2324_s7] sm:$0xf0]  ;;  %v2055_v21 = vld [vmem:[%s2324_s7 + $0x8] sm:$0xf] }
  0x92   :  { %2360 = vst [vmem:[#allocation27_spill] sm:$0xff] %v2040_v32  ;;  %v197_v16 = vmul.f32 0.5, %v196_v55  ;;  %v2060_v32 = vld [vmem:[%s2324_s7 + $0x8] sm:$0xf0]  ;;  %v2065_v55 = vld [vmem:[%s2324_s7 + $0x10] sm:$0xf] }
  0x93   :  { %2361 = vst [vmem:[#allocation28_spill] sm:$0xff] %v2045_v36  ;;  %v206_v6 = vmul.f32 %v1522_v18, %v204_v8  ;;  %v2075_v8 = vld [vmem:[%s2324_s7 + $0x18] sm:$0xf] }
  0x94   :  { %2362 = vst [vmem:[#allocation29_spill] sm:$0xff] %v2050_v14  ;;  %v2070_v14 = vld [vmem:[%s2324_s7 + $0x10] sm:$0xf0]  ;;  %v198_v36 = vsub.f32 1.5, %v197_v16  ;;  %v2090_v16 = vld [vmem:[%s2325_s8] ss:$0 sm:$0xff] }
  0x95   :  { %2363 = vst [vmem:[#allocation30_spill] sm:$0xff] %v2055_v21  ;;  %v208_v21 = vadd.f32 %v1523_v61, %v206_v6   ;;  %v2101_v6 = vld [vmem:[%s2329_s12] ss:$0 sm:$0xff] }
  0x96   :  { %2364 = vst [vmem:[#allocation31_spill] sm:$0xff] %v2060_v32  ;;  %v2080_v32 = vld [vmem:[%s2324_s7 + $0x18] sm:$0xf0] }
  0x97   :  { %2365 = vst [vmem:[#allocation32_spill] sm:$0xff] %v2065_v55  ;;  %v2085_v55 = vld [vmem:[%s2323_s6] ss:$0 sm:$0xff] }
  0x98   :  { %2366 = vst [vmem:[#allocation33_spill] sm:$0xff] %v2070_v14  ;;  %v2095_v14 = vld [vmem:[%s2328_s11] ss:$0 sm:$0xff]  ;;  %s2119_s11 = smov 0  }
  0x99   :  { %2367 = vst [vmem:[#allocation34_spill] sm:$0xff] %v2075_v8  ;;  %v199_v8 = vmul.f32 %v1535_v17, %v198_v36  ;;  %v181_v36 = vsub.f32 %v1722_v3, %v1767_v28 }
  0x9a   :  { %2368 = vst [vmem:[#allocation35_spill] sm:$0xff] %v2080_v32 }
  0x9b   :  { %2369 = vst [vmem:[#allocation36_spill] sm:$0xff] %v2085_v55  ;;  %v2106_v55 = vld [vmem:[%s2330_s13] ss:$0 sm:$0xff]  ;;  %v203_v52 = vsel %vm202_vm7, %v1535_v17, %v199_v8 }
  0x9c   :  { %2370 = vst [vmem:[#allocation37_spill] sm:$0xff] %v2090_v16  ;;  %v2111_v16 = vld [vmem:[%s2331_s14] ss:$0 sm:$0xff]  ;;  %v205_v32 = vmul.f32 %v203_v52, %v181_v36 }
  0x9d   :  { %2371 = vst [vmem:[#allocation38_spill] sm:$0xff] %v2095_v14 }
  0x9e   :  { %v207_v14 = vmul.f32 %v1522_v18, %v205_v32 }
  0xa0   :  { %v209_v51 = vadd.f32 %v1523_v61, %v207_v14  }
  0xa1 LB: > { %v2372_v25 = vld [vmem:[#allocation8_spill] sm:$0xff]  ;;  %v2373_v26 = vld [vmem:[#allocation9_spill] sm:$0xff]  ;;  %v1326_v28 = vor.u32 %v1782_v31, %v1777_v30  ;;  %v1344_v17 = vor.u32 %v1825_v42, %v1820_v41  ;;  %v2374_v22 = vld [vmem:[#allocation6_spill] sm:$0xff]  ;;  %v1322_v61 = vor.u32 %v1772_v29, %v1763_v27  ;;  %v1335_v32 = vor.u32 %v1805_v38, %v1797_v35  ;;  %s215_s11 = sadd.s32 1, %s1624_s11   ;;  %s1624_s11 = sphi %s2119_s11, %s215_s11   ;;  %v1620_v21 = vphi %v208_v21, %v2407_v21   ;;  %v1616_v51 = vphi %v209_v51, %v2406_v51  }
  0xa2   : > { %v1317_v3 = vor.u32 %v2373_v26, %v2372_v25  ;;  %v2375_v23 = vld [vmem:[#allocation7_spill] sm:$0xff]  ;;  %v1340_v14 = vor.u32 %v1815_v40, %v1810_v39  ;;  %v218_v8 = vpack.c.bf16 %v1620_v21, %v1620_v21  ;;  %v219_v36 = vpack.c.bf16 %v1616_v51, %v1616_v51  ;;  %v2376_v15 = vld [vmem:[#allocation20_spill] sm:$0xff]  ;;  %v2377_v11 = vld [vmem:[#allocation18_spill] sm:$0xff]  ;;  %p212_p0 = scmp.ge.s32.totalorder %s215_s11, 2  }
  0xa3   : > { %v1313_v18 = vor.u32 %v2375_v23, %v2374_v22  ;;  %272 = vmatpush.bf16.msra.mxu1 %v1326_v28  ;;  %324 = vmatpush.bf16.msra.mxu3 %v1344_v17  ;;  %v1353_v52 = vor.u32 %v1845_v47, %v1840_v46  ;;  %v1362_v28 = vor.u32 %v1867_v53, %v1860_v50  ;;  %v2378_v13 = vld [vmem:[#allocation19_spill] sm:$0xff]  ;;  %v2379_v4 = vld [vmem:[#allocation12_spill] sm:$0xff]  ;;  %v2380_v5 = vld [vmem:[#allocation13_spill] sm:$0xff]  ;;  %vm564_vm8 = vcmask 64512   ;;  %s1287_s14 = sshll.u32 (%p212_p0), %s2332_s15, 4  ;;  %s1627_s30 = smov (%p212_p0), [#allocation2]   ;;  %s1288_s14 = int_to_ptr.hbm [resolvable:$true] %s1287_s14 }
  0xa4   : > { %246 = vmatpush.bf16.msra.mxu0 %v1317_v3  ;;  %298 = vmatpush.bf16.msra.mxu2 %v1335_v32  ;;  %v1331_v3 = vor.u32 %v1792_v34, %v1787_v33  ;;  %v222_v17 = vunpack.c.l.b16 %v218_v8  ;;  %v223_v22 = vunpack.c.l.b16 %v219_v36  ;;  %v1371_v23 = vor.u32 %v1888_v58, %v1883_v57  ;;  %v2381_v1 = vld [vmem:[#allocation10_spill] sm:$0xff]  ;;  %v2382_v2 = vld [vmem:[#allocation11_spill] sm:$0xff]  ;;  %v2383_v9 = vld [vmem:[#allocation16_spill] sm:$0xff]  ;;  %s1285_s16 = sshll.u32 (%p212_p0), %s1627_s30, 4  ;;  %s1628_s17 = smov (%p212_p0), 128   ;;  %s1286_s16 = int_to_ptr.vmem [resolvable:$true] %s1285_s16 }
  0xa5   : > { %v1380_v26 = vor.u32 %v1909_v63, %v1904_v62  ;;  %v1349_v32 = vor.u32 %v1835_v45, %v1830_v43  ;;  %v1358_v8 = vor.u32 %v1855_v49, %v1850_v48  ;;  %v1385_v36 = vor.u32 %v2382_v2, %v2381_v1  ;;  %v2384_v10 = vld [vmem:[#allocation17_spill] sm:$0xff]  ;;  %v2385_v7 = vld [vmem:[#allocation14_spill] sm:$0xff]  ;;  %v2389_v0 = vld [vmem:[#allocation23_spill] sm:$0xff]  ;;  %s1629_s18 = smov (%p212_p0), 8  }
  0xa6   : > { %v224_v25 = vpack.c.b16 %v223_v22, %v222_v17  ;;  %v1367_v22 = vor.u32 %v1878_v56, %v1872_v54  ;;  %vm824_vm9 = vcmask 1043456   ;;  %vm1207_vm1 = vcmask 523264  }
  0xa7   : > { %273 = vmatpush.bf16.msra.mxu1 %v1322_v61  ;;  %325 = vmatpush.bf16.msra.mxu3 %v1340_v14  ;;  %v1389_v61 = vor.u32 %v2380_v5, %v2379_v4  ;;  %v1416_v14 = vor.u32 %v1994_v44, %v1989_v37 }
  0xa8   : > { %247 = vmatpush.bf16.msra.mxu0 %v1313_v18  ;;  %299 = vmatpush.bf16.msra.mxu2 %v1331_v3  ;;  %v1376_v18 = vor.u32 %v1899_v60, %v1894_v59  ;;  %v1398_v3 = vor.u32 %v2384_v10, %v2383_v9 }
  0xaa   : > { %1327 = vmatmul.msk.bf16.vlgmr.msra.gmra.mxu1 %vm150_vm0, %v224_v25  ;;  %1345 = vmatmul.msk.bf16.vlgmr.msra.gmra.mxu3 %vm150_vm0, %v224_v25 }
  0xab   : > { %384 = vmatpush.bf16.msrb.mxu1 %v1362_v28  ;;  %1318 = vmatmul.msk.bf16.vlgmr.msra.gmra.mxu0 %vm150_vm0, %v224_v25  ;;  %v2386_v28 = vld [vmem:[#allocation15_spill] sm:$0xff] }
  0xac   : > { %358 = vmatpush.bf16.msrb.mxu0 %v1353_v52  ;;  %410 = vmatpush.bf16.msrb.mxu2 %v1371_v23  ;;  %v1407_v23 = vor.u32 %v1972_v19, %v2376_v15  ;;  %v1412_v52 = vor.u32 %v1982_v24, %v1977_v20  ;;  %v1394_v17 = vor.u32 %v2386_v28, %v2385_v7 }
  0xad   : > { %1336 = vmatmul.msk.bf16.vlgmr.msra.gmra.mxu2 %vm150_vm0, %v224_v25  ;;  %436 = vmatpush.bf16.msrb.mxu3 %v1380_v26  ;;  %v1403_v26 = vor.u32 %v2378_v13, %v2377_v11 }
  0xaf   : > { %385 = vmatpush.bf16.msrb.mxu1 %v1358_v8 }
  0xb0   : > { %359 = vmatpush.bf16.msrb.mxu0 %v1349_v32  ;;  %411 = vmatpush.bf16.msrb.mxu2 %v1367_v22 }
  0xb1   : > { %437 = vmatpush.bf16.msrb.mxu3 %v1376_v18 }
  0xb3   : > { %496 = vmatpush.bf16.msra.mxu1 %v1398_v3 }
  0xb4   : > { %522 = vmatpush.bf16.msra.mxu2 %v1407_v23  ;;  %470 = vmatpush.bf16.msra.mxu0 %v1389_v61 }
  0xb5   : > { %548 = vmatpush.bf16.msra.mxu3 %v1416_v14 }
  0xb7   : > { %497 = vmatpush.bf16.msra.mxu1 %v1394_v17 }
  0xb8   : > { %523 = vmatpush.bf16.msra.mxu2 %v1403_v26  ;;  %471 = vmatpush.bf16.msra.mxu0 %v1385_v36 }
  0xb9   : > { %549 = vmatpush.bf16.msra.mxu3 %v1412_v52 }
  0xba   : > { %1363 = vmatmul.msk.bf16.vlgmr.msrb.gmra.mxu1 %vm150_vm0, %v224_v25  ;;  %1381 = vmatmul.msk.bf16.vlgmr.msrb.gmra.mxu3 %vm150_vm0, %v224_v25 }
  0xbb   : > { %1354 = vmatmul.msk.bf16.vlgmr.msrb.gmra.mxu0 %vm150_vm0, %v224_v25 }
  0xbd   : > { %1372 = vmatmul.msk.bf16.vlgmr.msrb.gmra.mxu2 %vm150_vm0, %v224_v25 }
  0xca   : > { %1417 = vmatmul.msk.bf16.vlgmr.msra.gmra.mxu3 %vm150_vm0, %v224_v25  ;;  %1399 = vmatmul.msk.bf16.vlgmr.msra.gmra.mxu1 %vm150_vm0, %v224_v25 }
  0xcb   : > { %1390 = vmatmul.msk.bf16.vlgmr.msra.gmra.mxu0 %vm150_vm0, %v224_v25 }
  0xcd   : > { %1408 = vmatmul.msk.bf16.vlgmr.msra.gmra.mxu2 %vm150_vm0, %v224_v25 }
 0x127   : > { %v275_v8 = vpop.f32.mrf.mxu1 }
 0x128   : > { %v249_v32 = vpop.f32.mrf.mxu0  ;;  %v334_v9 = vpack.c.bf16 %v275_v8, %v275_v8 }
 0x129   : > { %v332_v7 = vpack.c.bf16 %v249_v32, %v249_v32 }
 0x12d   : > { %v327_v22 = vpop.f32.mrf.mxu3 }
 0x12f   : > { %v277_v23 = vpop.f32.mrf.mxu1 }
 0x130   : > { %v251_v18 = vpop.f32.mrf.mxu0  ;;  %v301_v26 = vpop.f32.mrf.mxu2 }
 0x131   : > { %v333_v8 = vpack.c.bf16 %v251_v18, %v251_v18 }
 0x135   : > { %v329_v61 = vpop.f32.mrf.mxu3 }
 0x137   : > { %v387_v36 = vpop.f32.mrf.mxu1 }
 0x138   : > { %v361_v14 = vpop.f32.mrf.mxu0  ;;  %v446_v3 = vpack.c.bf16 %v387_v36, %v387_v36  ;;  %v303_v1 = vpop.f32.mrf.mxu2 }
 0x139   : > { %v444_v52 = vpack.c.bf16 %v361_v14, %v361_v14  ;;  %v337_v18 = vpack.c.bf16 %v303_v1, %v303_v1 }
 0x13a   : > { %v607_v2 = vsel %vm564_vm8, %v446_v3, 0  ;;  %v335_v3 = vpack.c.bf16 %v277_v23, %v277_v23 }
 0x13b   : > { %v569_v28 = vsel %vm564_vm8, %v444_v52, 0  ;;  %616 = vmatpush.bf16.xpose.msrb.mxu2 %v607_v2 }
 0x13c   : > { %578 = vmatpush.bf16.xpose.msrb.mxu0 %v569_v28 }
 0x13d   : > { %v439_v25 = vpop.f32.mrf.mxu3 }
 0x13e   : > { %v450_v5 = vpack.c.bf16 %v439_v25, %v439_v25 }
 0x13f   : > { %v389_v4 = vpop.f32.mrf.mxu1 }
 0x140   : > { %v363_v17 = vpop.f32.mrf.mxu0  ;;  %v447_v11 = vpack.c.bf16 %v389_v4, %v389_v4  ;;  %v413_v13 = vpop.f32.mrf.mxu2  ;;  %v683_v15 = vsel %vm564_vm8, %v450_v5, 0 }
 0x141   : > { %v445_v10 = vpack.c.bf16 %v363_v17, %v363_v17  ;;  %v448_v14 = vpack.c.bf16 %v413_v13, %v413_v13 }
 0x142   : > { %v626_v52 = vsel %vm564_vm8, %v447_v11, 0  ;;  %1420 = vmatmul.msk.bf16.vlgmr.msrb.gmra.mxu2 %vm564_vm8, %v334_v9  ;;  %v338_v9 = vpack.c.bf16 %v327_v22, %v327_v22  ;;  %v336_v11 = vpack.c.bf16 %v301_v26, %v301_v26 }
 0x143   : > { %v588_v36 = vsel %vm564_vm8, %v445_v10, 0  ;;  %1418 = vmatmul.msk.bf16.vlgmr.msrb.gmra.mxu0 %vm564_vm8, %v332_v7  ;;  %635 = vmatpush.bf16.xpose.msrb.mxu3 %v626_v52  ;;  %v645_v2 = vsel %vm564_vm8, %v448_v14, 0 }
 0x144   : > { %597 = vmatpush.bf16.xpose.msrb.mxu1 %v588_v36  ;;  %654 = vmatpush.bf16.xpose.msra.mxu0 %v645_v2 }
 0x145   : > { %692 = vmatpush.bf16.xpose.msra.mxu2 %v683_v15  ;;  %v441_v32 = vpop.f32.mrf.mxu3  ;;  %v339_v15 = vpack.c.bf16 %v329_v61, %v329_v61 }
 0x146   : > { %v451_v4 = vpack.c.bf16 %v441_v32, %v441_v32 }
 0x147   : > { %v499_v36 = vpop.f32.mrf.mxu1 }
 0x148   : > { %v415_v5 = vpop.f32.mrf.mxu2  ;;  %v702_v13 = vsel %vm564_vm8, %v451_v4, 0  ;;  %v473_v23 = vpop.f32.mrf.mxu0  ;;  %v558_v61 = vpack.c.bf16 %v499_v36, %v499_v36 }
 0x149   : > { %v449_v10 = vpack.c.bf16 %v415_v5, %v415_v5  ;;  %v556_v28 = vpack.c.bf16 %v473_v23, %v473_v23 }
 0x14a   : > { %1421 = vmatmul.msk.bf16.vlgmr.msrb.gmra.mxu3 %vm564_vm8, %v335_v3  ;;  %v864_v3 = vsel %vm824_vm9, %v558_v61, 0 }
 0x14b   : > { %1419 = vmatmul.msk.bf16.vlgmr.msrb.gmra.mxu1 %vm564_vm8, %v333_v8  ;;  %711 = vmatpush.bf16.xpose.msra.mxu3 %v702_v13  ;;  %v664_v7 = vsel %vm564_vm8, %v449_v10, 0  ;;  %v826_v14 = vsel %vm824_vm9, %v556_v28, 0 }
 0x14c   : > { %673 = vmatpush.bf16.xpose.msra.mxu1 %v664_v7  ;;  %835 = vmatpush.bf16.msrb.mxu0 %v826_v14 }
 0x14d   : > { %v551_v2 = vpop.f32.mrf.mxu3  ;;  %873 = vmatpush.bf16.msrb.mxu2 %v864_v3 }
 0x14e   : > { %v562_v4 = vpack.c.bf16 %v551_v2, %v551_v2 }
 0x14f   : > { %v501_v10 = vpop.f32.mrf.mxu1 }
 0x150   : > { %v525_v25 = vpop.f32.mrf.mxu2  ;;  %v475_v26 = vpop.f32.mrf.mxu0  ;;  %v940_v13 = vsel %vm824_vm9, %v562_v4, 0  ;;  %v559_v7 = vpack.c.bf16 %v501_v10, %v501_v10 }
 0x151   : > { %v560_v17 = vpack.c.bf16 %v525_v25, %v525_v25  ;;  %v557_v52 = vpack.c.bf16 %v475_v26, %v475_v26 }
 0x152   : > { %1424 = vmatmul.msk.bf16.vlgmr.msra.gmra.mxu2 %vm564_vm8, %v338_v9 }
 0x153   : > { %1422 = vmatmul.msk.bf16.vlgmr.msra.gmra.mxu0 %vm564_vm8, %v336_v11  ;;  %v902_v22 = vsel %vm824_vm9, %v560_v17, 0  ;;  %v845_v8 = vsel %vm824_vm9, %v557_v52, 0  ;;  %949 = vmatpush.bf16.msra.mxu2 %v940_v13 }
 0x154   : > { %911 = vmatpush.bf16.msra.mxu0 %v902_v22  ;;  %854 = vmatpush.bf16.msrb.mxu1 %v845_v8 }
 0x155   : > { %v553_v9 = vpop.f32.mrf.mxu3 }
 0x156   : > { %v563_v11 = vpack.c.bf16 %v553_v9, %v553_v9 }
 0x158   : > { %v527_v1 = vpop.f32.mrf.mxu2 }
 0x159   : > { %v561_v32 = vpack.c.bf16 %v527_v1, %v527_v1 }
 0x15a   : > { %1425 = vmatmul.msk.bf16.vlgmr.msra.gmra.mxu3 %vm564_vm8, %v339_v15  ;;  %v883_v15 = vsel %vm824_vm9, %v559_v7, 0 }
 0x15b   : > { %1423 = vmatmul.msk.bf16.vlgmr.msra.gmra.mxu1 %vm564_vm8, %v337_v18  ;;  %v921_v5 = vsel %vm824_vm9, %v561_v32, 0  ;;  %v959_v18 = vsel %vm824_vm9, %v563_v11, 0  ;;  %892 = vmatpush.bf16.msrb.mxu3 %v883_v15 }
 0x15c   : > { %930 = vmatpush.bf16.msra.mxu1 %v921_v5 }
 0x15f   : > { %968 = vmatpush.bf16.msra.mxu3 %v959_v18 }
 0x1c0   : > { %v580_v23 = vpop.f32.mrf.mxu0 }
 0x1c1   : > { %v717_v28 = vmul.f32 0.35355338, %v580_v23 }
 0x1c3   : > { %v725_v25 = vsel %vm564_vm8, %v717_v28, -inf }
 0x1c4   : > { %726 = vmax.xlane.f32.xlu1 %v725_v25 }
 0x1c5   : > { %v618_v17 = vpop.f32.mrf.mxu2 }
 0x1c6   : > { %v719_v14 = vmul.f32 0.35355338, %v618_v17 }
 0x1c8   : > { %v582_v22 = vpop.f32.mrf.mxu0  ;;  %v599_v26 = vpop.f32.mrf.mxu1  ;;  %v731_v52 = vsel %vm564_vm8, %v719_v14, -inf }
 0x1c9   : > { %v718_v36 = vmul.f32 0.35355338, %v599_v26  ;;  %732 = vmax.xlane.f32.xlu0 %v731_v52 }
 0x1cb   : > { %v728_v61 = vsel %vm564_vm8, %v718_v36, -inf }
 0x1cc   : > { %729 = vmax.xlane.f32.xlu1 %v728_v61 }
 0x1cd   : > { %v620_v1 = vpop.f32.mrf.mxu2  ;;  %v637_v2 = vpop.f32.mrf.mxu3 }
 0x1ce   : > { %v720_v32 = vmul.f32 0.35355338, %v637_v2 }
 0x1d0   : > { %v601_v4 = vpop.f32.mrf.mxu1  ;;  %v656_v8 = vpop.f32.mrf.mxu0  ;;  %v734_v3 = vsel %vm564_vm8, %v720_v32, -inf }
 0x1d1   : > { %735 = vmax.xlane.f32.xlu0 %v734_v3  ;;  %v721_v5 = vmul.f32 0.35355338, %v656_v8 }
 0x1d3   : > { %v737_v23 = vsel %vm564_vm8, %v721_v5, -inf }
 0x1d5   : > { %v639_v13 = vpop.f32.mrf.mxu3  ;;  %v694_v10 = vpop.f32.mrf.mxu2 }
 0x1d6   : > { %v723_v7 = vmul.f32 0.35355338, %v694_v10 }
 0x1d8   : > { %v658_v9 = vpop.f32.mrf.mxu0  ;;  %v675_v11 = vpop.f32.mrf.mxu1  ;;  %v743_v18 = vsel %vm564_vm8, %v723_v7, -inf }
 0x1d9   : > { %v722_v15 = vmul.f32 0.35355338, %v675_v11  ;;  %744 = vmax.xlane.f32.xlu2 %v743_v18  ;;  %738 = vmax.xlane.f32.xlu0 %v737_v23 }
 0x1db   : > { %v740_v25 = vsel %vm564_vm8, %v722_v15, -inf }
 0x1dc   : > { %741 = vmax.xlane.f32.xlu1 %v740_v25 }
 0x1dd   : > { %v696_v17 = vpop.f32.mrf.mxu2  ;;  %v713_v22 = vpop.f32.mrf.mxu3 }
 0x1de   : > { %v724_v26 = vmul.f32 0.35355338, %v713_v22 }
 0x1e0   : > { %v677_v52 = vpop.f32.mrf.mxu1  ;;  %v746_v61 = vsel %vm564_vm8, %v724_v26, -inf }
 0x1e1   : > { %747 = vmax.xlane.f32.xlu2 %v746_v61 }
 0x1e5   : > { %v715_v1 = vpop.f32.mrf.mxu3 }
 0x237   : > { %v727_v2 = vpop.xlane.xlu1 %726 }
 0x238   : > { %v749_v4 = vsub.f32 %v717_v28, %v727_v2 }
 0x23a   : > { %v757_v8 = vmul.f32 1.442695, %v749_v4 }
 0x23c   : > { %1536 = vpow2.f32 %v757_v8  ;;  %v733_v3 = vpop.xlane.xlu0 %732 }
 0x23d   : > { %v751_v13 = vsub.f32 %v719_v14, %v733_v3 }
 0x23f   : > { %v730_v10 = vpop.xlane.xlu1 %729  ;;  %v761_v9 = vmul.f32 1.442695, %v751_v13 }
 0x240   : > { %v750_v11 = vsub.f32 %v718_v36, %v730_v10 }
 0x241   : > { %1538 = vpow2.f32 %v761_v9 }
 0x242   : > { %v1537_v18 = vpop.eup %1536  ;;  %v759_v25 = vmul.f32 1.442695, %v750_v11 }
 0x243   : > { %v773_v23 = vsel %vm564_vm8, %v1537_v18, 0.0 }
 0x244   : > { %774 = vadd.xlane.f32.xlu1 %v773_v23  ;;  %v736_v17 = vpop.xlane.xlu0 %735  ;;  %1540 = vpow2.f32 %v759_v25 }
 0x245   : > { %v752_v22 = vsub.f32 %v720_v32, %v736_v17 }
 0x247   : > { %v1539_v52 = vpop.eup %1538  ;;  %v763_v61 = vmul.f32 1.442695, %v752_v22 }
 0x248   : > { %v779_v28 = vsel %vm564_vm8, %v1539_v52, 0.0 }
 0x249   : > { %1542 = vpow2.f32 %v763_v61  ;;  %780 = vadd.xlane.f32.xlu2 %v779_v28 }
 0x24a   : > { %v1541_v2 = vpop.eup %1540 }
 0x24b   : > { %v776_v32 = vsel %vm564_vm8, %v1541_v2, 0.0 }
 0x24c   : > { %v745_v1 = vpop.xlane.xlu2 %744  ;;  %v739_v14 = vpop.xlane.xlu0 %738 }
 0x24d   : > { %v755_v4 = vsub.f32 %v723_v7, %v745_v1  ;;  %v753_v36 = vsub.f32 %v721_v5, %v739_v14 }
 0x24f   : > { %v742_v8 = vpop.xlane.xlu1 %741  ;;  %v1543_v3 = vpop.eup %1542  ;;  %v769_v13 = vmul.f32 1.442695, %v755_v4  ;;  %v765_v10 = vmul.f32 1.442695, %v753_v36 }
 0x250   : > { %v754_v9 = vsub.f32 %v722_v15, %v742_v8  ;;  %v782_v11 = vsel %vm564_vm8, %v1543_v3, 0.0 }
 0x251   : > { %1544 = vpow2.f32 %v769_v13  ;;  %783 = vadd.xlane.f32.xlu0 %v782_v11  ;;  %777 = vadd.xlane.f32.xlu2 %v776_v32 }
 0x252   : > { %1546 = vpow2.f32 %v765_v10  ;;  %v767_v23 = vmul.f32 1.442695, %v754_v9 }
 0x254   : > { %v748_v25 = vpop.xlane.xlu2 %747  ;;  %1548 = vpow2.f32 %v767_v23 }
 0x255   : > { %v756_v17 = vsub.f32 %v724_v26, %v748_v25 }
 0x257   : > { %v1545_v22 = vpop.eup %1544  ;;  %v771_v7 = vmul.f32 1.442695, %v756_v17 }
 0x258   : > { %v1547_v5 = vpop.eup %1546  ;;  %v791_v61 = vsel %vm564_vm8, %v1545_v22, 0.0 }
 0x259   : > { %1550 = vpow2.f32 %v771_v7  ;;  %792 = vadd.xlane.f32.xlu0 %v791_v61  ;;  %v785_v15 = vsel %vm564_vm8, %v1547_v5, 0.0 }
 0x25a   : > { %786 = vadd.xlane.f32.xlu2 %v785_v15  ;;  %v1549_v28 = vpop.eup %1548 }
 0x25b   : > { %v788_v4 = vsel %vm564_vm8, %v1549_v28, 0.0 }
 0x25f   : > { %v1551_v1 = vpop.eup %1550 }
 0x260   : > { %v794_v14 = vsel %vm564_vm8, %v1551_v1, 0.0 }
 0x261   : > { %795 = vadd.xlane.f32.xlu1 %v794_v14  ;;  %789 = vadd.xlane.f32.xlu0 %v788_v4 }
 0x2b7   : > { %v775_v26 = vpop.xlane.xlu1 %774 }
 0x2b8   : > { %1552 = vrcp.f32 %v775_v26 }
 0x2bc   : > { %v781_v36 = vpop.xlane.xlu2 %780 }
 0x2bd   : > { %1554 = vrcp.f32 %v781_v36 }
 0x2be   : > { %v1553_v8 = vpop.eup %1552 }
 0x2bf   : > { %v805_v13 = vmul.f32 %v1553_v8, %v1537_v18 }
 0x2c1   : > { %v813_v10 = vpack.c.bf16 %v805_v13, %v805_v13 }
 0x2c3   : > { %1426 = vmatmul.msk.bf16.vlgmr.msrb.gmra.mxu0 %vm564_vm8, %v813_v10  ;;  %v1555_v9 = vpop.eup %1554 }
 0x2c4   : > { %v807_v11 = vmul.f32 %v1555_v9, %v1539_v52  ;;  %v784_v32 = vpop.xlane.xlu0 %783  ;;  %v778_v23 = vpop.xlane.xlu2 %777 }
 0x2c5   : > { %1556 = vrcp.f32 %v784_v32 }
 0x2c6   : > { %v815_v25 = vpack.c.bf16 %v807_v11, %v807_v11  ;;  %1558 = vrcp.f32 %v778_v23 }
 0x2c8   : > { %1428 = vmatmul.msk.bf16.vlgmr.msrb.gmra.mxu2 %vm564_vm8, %v815_v25 }
 0x2cb   : > { %v1557_v17 = vpop.eup %1556 }
 0x2cc   : > { %v1559_v7 = vpop.eup %1558  ;;  %v808_v61 = vmul.f32 %v1557_v17, %v1543_v3  ;;  %v793_v15 = vpop.xlane.xlu0 %792 }
 0x2cd   : > { %v806_v14 = vmul.f32 %v1559_v7, %v1541_v2  ;;  %1560 = vrcp.f32 %v793_v15  ;;  %v787_v4 = vpop.xlane.xlu2 %786 }
 0x2ce   : > { %v816_v18 = vpack.c.bf16 %v808_v61, %v808_v61  ;;  %1562 = vrcp.f32 %v787_v4  ;;  %v2388_v61 = vld [vmem:[#allocation22_spill] sm:$0xff]  ;;  %v1041_v4 = vsel %vm824_vm9, %v2015_v12, 0 }
 0x2cf   : > { %v814_v26 = vpack.c.bf16 %v806_v14, %v806_v14  ;;  %v1016_v15 = vsel %vm824_vm9, %v2388_v61, 0  ;;  %1050 = vmatpush.bf16.msrb.mxu2 %v1041_v4 }
 0x2d0   : > { %1429 = vmatmul.msk.bf16.vlgmr.msrb.gmra.mxu3 %vm564_vm8, %v816_v18 }
 0x2d1   : > { %1427 = vmatmul.msk.bf16.vlgmr.msrb.gmra.mxu1 %vm564_vm8, %v814_v26 }
 0x2d2   : > { %1025 = vmatpush.bf16.msrb.mxu1 %v1016_v15 }
 0x2d3   : > { %v1561_v52 = vpop.eup %1560 }
 0x2d4   : > { %v1563_v36 = vpop.eup %1562  ;;  %v811_v8 = vmul.f32 %v1561_v52, %v1545_v22  ;;  %v790_v13 = vpop.xlane.xlu0 %789  ;;  %v2387_v22 = vld [vmem:[#allocation21_spill] sm:$0xff] }
 0x2d5   : > { %v796_v10 = vpop.xlane.xlu1 %795  ;;  %v809_v9 = vmul.f32 %v1563_v36, %v1547_v5  ;;  %1564 = vrcp.f32 %v790_v13  ;;  %v991_v5 = vsel %vm824_vm9, %v2387_v22, 0 }
 0x2d6   : > { %v819_v11 = vpack.c.bf16 %v811_v8, %v811_v8  ;;  %1566 = vrcp.f32 %v796_v10  ;;  %1000 = vmatpush.bf16.msrb.mxu0 %v991_v5 }
 0x2d7   : > { %v817_v3 = vpack.c.bf16 %v809_v9, %v809_v9 }
 0x2d8   : > { %1432 = vmatmul.msk.bf16.vlgmr.msra.gmra.mxu2 %vm564_vm8, %v819_v11 }
 0x2d9   : > { %1430 = vmatmul.msk.bf16.vlgmr.msra.gmra.mxu0 %vm564_vm8, %v817_v3 }
 0x2db   : > { %v1565_v2 = vpop.eup %1564 }
 0x2dc   : > { %v1567_v32 = vpop.eup %1566  ;;  %v810_v23 = vmul.f32 %v1565_v2, %v1549_v28 }
 0x2dd   : > { %v812_v25 = vmul.f32 %v1567_v32, %v1551_v1  ;;  %v1066_v1 = vsel %vm824_vm9, %v2389_v0, 0 }
 0x2de   : > { %v818_v17 = vpack.c.bf16 %v810_v23, %v810_v23  ;;  %1075 = vmatpush.bf16.msrb.mxu3 %v1066_v1 }
 0x2df   : > { %v820_v7 = vpack.c.bf16 %v812_v25, %v812_v25 }
 0x2e1   : > { %1431 = vmatmul.msk.bf16.vlgmr.msra.gmra.mxu1 %vm564_vm8, %v818_v17  ;;  %1433 = vmatmul.msk.bf16.vlgmr.msra.gmra.mxu3 %vm564_vm8, %v820_v7 }
 0x340   : > { %v837_v14 = vpop.f32.mrf.mxu0 }
 0x341   : > { %v974_v26 = vpack.c.bf16 %v837_v14, %v837_v14 }
 0x343   : > { %v984_v8 = vunpack.c.l.b16 %v974_v26 }
 0x348   : > { %v839_v28 = vpop.f32.mrf.mxu0 }
 0x34b   : > { %v875_v18 = vpop.f32.mrf.mxu2 }
 0x34c   : > { %v976_v10 = vpack.c.bf16 %v875_v18, %v875_v18 }
 0x34e   : > { %v856_v52 = vpop.f32.mrf.mxu1  ;;  %v1009_v32 = vunpack.c.l.b16 %v976_v10 }
 0x34f   : > { %v975_v36 = vpack.c.bf16 %v856_v52, %v856_v52 }
 0x351   : > { %v985_v13 = vunpack.c.l.b16 %v975_v36 }
 0x353   : > { %v986_v9 = vpack.c.b16 %v985_v13, %v984_v8  ;;  %v877_v11 = vpop.f32.mrf.mxu2  ;;  %v894_v3 = vpop.f32.mrf.mxu3 }
 0x354   : > { %v977_v2 = vpack.c.bf16 %v894_v3, %v894_v3 }
 0x355   : > { %1434 = vmatmul.msk.bf16.vlgmr.msrb.gmra.mxu0 %vm564_vm8, %v986_v9 }
 0x356   : > { %v1010_v23 = vunpack.c.l.b16 %v977_v2  ;;  %v858_v25 = vpop.f32.mrf.mxu1  ;;  %v913_v17 = vpop.f32.mrf.mxu0 }
 0x357   : > { %v978_v61 = vpack.c.bf16 %v913_v17, %v913_v17 }
 0x358   : > { %v1011_v7 = vpack.c.b16 %v1010_v23, %v1009_v32 }
 0x359   : > { %v1034_v28 = vunpack.c.l.b16 %v978_v61 }
 0x35a   : > { %1435 = vmatmul.msk.bf16.vlgmr.msrb.gmra.mxu1 %vm564_vm8, %v1011_v7 }
 0x35b   : > { %v896_v22 = vpop.f32.mrf.mxu3  ;;  %v951_v5 = vpop.f32.mrf.mxu2 }
 0x35c   : > { %v980_v18 = vpack.c.bf16 %v951_v5, %v951_v5 }
 0x35e   : > { %v915_v15 = vpop.f32.mrf.mxu0  ;;  %v932_v14 = vpop.f32.mrf.mxu1  ;;  %v1059_v10 = vunpack.c.l.b16 %v980_v18 }
 0x35f   : > { %v979_v4 = vpack.c.bf16 %v932_v14, %v932_v14 }
 0x361   : > { %v1035_v1 = vunpack.c.l.b16 %v979_v4 }
 0x363   : > { %v1036_v26 = vpack.c.b16 %v1035_v1, %v1034_v28  ;;  %v953_v52 = vpop.f32.mrf.mxu2 }
 0x364   : > { %v970_v36 = vpop.f32.mrf.mxu3 }
 0x365   : > { %v981_v8 = vpack.c.bf16 %v970_v36, %v970_v36  ;;  %1436 = vmatmul.msk.bf16.vlgmr.msrb.gmra.mxu2 %vm564_vm8, %v1036_v26 }
 0x366   : > { %v934_v13 = vpop.f32.mrf.mxu1 }
 0x367   : > { %v1060_v9 = vunpack.c.l.b16 %v981_v8 }
 0x369   : > { %v1061_v11 = vpack.c.b16 %v1060_v9, %v1059_v10 }
 0x36b   : > { %1437 = vmatmul.msk.bf16.vlgmr.msrb.gmra.mxu3 %vm564_vm8, %v1061_v11 }
 0x36c   : > { %v972_v3 = vpop.f32.mrf.mxu3 }
 0x3d2   : > { %v1002_v32 = vpop.f32.mrf.mxu0 }
 0x3d3   : > { %v1082_v17 = vsel %vm150_vm0, %v1002_v32, 0.0 }
 0x3d7   : > { %v1027_v2 = vpop.f32.mrf.mxu1 }
 0x3d8   : > { %v1083_v25 = vsel %vm150_vm0, %v1027_v2, 0.0 }
 0x3d9   : > { %v1084_v22 = vadd.f32 %v1083_v25, %v1082_v17 }
 0x3da   : > { %v1004_v4 = vpop.f32.mrf.mxu0 }
 0x3db   : > { %v1089_v52 = vsel %vm150_vm0, %v1004_v4, 0.0 }
 0x3df   : > { %v1029_v5 = vpop.f32.mrf.mxu1 }
 0x3e0   : > { %v1090_v18 = vsel %vm150_vm0, %v1029_v5, 0.0 }
 0x3e1   : > { %v1091_v8 = vadd.f32 %v1090_v18, %v1089_v52  ;;  %v2393_v18 = vld [vmem:[#allocation24_spill] sm:$0xff] }
 0x3e8   : > { %v1052_v23 = vpop.f32.mrf.mxu2 }
 0x3e9   : > { %v1085_v7 = vsel %vm150_vm0, %v1052_v23, 0.0 }
 0x3ea   : > { %v1086_v61 = vadd.f32 %v1085_v7, %v1084_v22  ;;  %v2390_v22 = vld [vmem:[#allocation5_spill] sm:$0xff] }
 0x3ee   : > { %v1077_v15 = vpop.f32.mrf.mxu3 }
 0x3ef   : > { %v1087_v14 = vsel %vm150_vm0, %v1077_v15, 0.0  ;;  %v2391_v15 = vld [vmem:[#allocation26_spill] sm:$0xff] }
 0x3f0   : > { %v1088_v28 = vadd.f32 %v1087_v14, %v1086_v61  ;;  %v1054_v1 = vpop.f32.mrf.mxu2  ;;  %v2392_v14 = vld [vmem:[#allocation27_spill] sm:$0xff] }
 0x3f1   : > { %v1092_v36 = vsel %vm150_vm0, %v1054_v1, 0.0  ;;  %v1445_v4 = vor.u32 %v2392_v14, %v2391_v15 }
 0x3f2   : > { %v1096_v26 = vadd.f32 %v1620_v21, %v1088_v28  ;;  %v1093_v9 = vadd.f32 %v1092_v36, %v1091_v8 }
 0x3f3   : > { %1172 = vmatpush.bf16.msra.mxu0 %v1445_v4 }
 0x3f4   : > { %v1098_v13 = vsel %vm150_vm0, %v1096_v26, 0.0  ;;  %v1106_v10 = vmul.f32 %v1096_v26, %v1096_v26 }
 0x3f5   : > { %1099 = vadd.xlane.f32.xlu1 %v1098_v13 }
 0x3f6   : > { %v1079_v11 = vpop.f32.mrf.mxu3  ;;  %v1108_v3 = vsel %vm150_vm0, %v1106_v10, 0.0 }
 0x3f7   : > { %v1094_v2 = vsel %vm150_vm0, %v1079_v11, 0.0  ;;  %1109 = vadd.xlane.f32.xlu0 %v1108_v3 }
 0x3f8   : > { %v1095_v32 = vadd.f32 %v1094_v2, %v1093_v9 }
 0x3fa   : > { %v1097_v23 = vadd.f32 %v1616_v51, %v1095_v32  ;;  %v2394_v51 = vld [vmem:[#allocation25_spill] sm:$0xff] }
 0x3fb   : > { %v1441_v52 = vor.u32 %v2394_v51, %v2393_v18 }
 0x3fc   : > { %v1101_v21 = vsel %vm150_vm0, %v1097_v23, 0.0  ;;  %v1107_v25 = vmul.f32 %v1097_v23, %v1097_v23 }
 0x3fd   : > { %1102 = vadd.xlane.f32.xlu2 %v1101_v21  ;;  %1173 = vmatpush.bf16.msra.mxu0 %v1441_v52 }
 0x3fe   : > { %v1111_v17 = vsel %vm150_vm0, %v1107_v25, 0.0 }
 0x3ff   : > { %1112 = vadd.xlane.f32.xlu1 %v1111_v17 }
 0x468   : > { %v1100_v7 = vpop.xlane.xlu1 %1099 }
 0x469   : > { %v1104_v5 = vmul.f32 %v1100_v7, %v2390_v22 }
 0x46a   : > { %v1110_v61 = vpop.xlane.xlu0 %1109 }
 0x46b   : > { %v1116_v28 = vmul.f32 %v1104_v5, %v1104_v5  ;;  %v1114_v1 = vmul.f32 %v1110_v61, %v2390_v22  ;;  %v1120_v51 = vsub.f32 %v1096_v26, %v1104_v5  ;;  %v2396_v26 = vld [vmem:[#allocation34_spill] sm:$0xff]  ;;  %v2397_v5 = vld [vmem:[#allocation35_spill] sm:$0xff] }
 0x46d   : > { %v1118_v36 = vsub.f32 %v1114_v1, %v1116_v28 }
 0x46f   : > { %v1122_v8 = vadd.f32 1e-06, %v1118_v36 }
 0x470   : > { %v1103_v13 = vpop.xlane.xlu2 %1102 }
 0x471   : > { %1568 = vrsqrt.f32 %v1122_v8  ;;  %v1105_v10 = vmul.f32 %v1103_v13, %v2390_v22  ;;  %vm1130_vm11 = vweird.f32 %v1122_v8 }
 0x472   : > { %v1113_v9 = vpop.xlane.xlu1 %1112 }
 0x473   : > { %v1117_v11 = vmul.f32 %v1105_v10, %v1105_v10  ;;  %v1115_v3 = vmul.f32 %v1113_v9, %v2390_v22  ;;  %v1121_v9 = vsub.f32 %v1097_v23, %v1105_v10  ;;  %v2399_v23 = vld [vmem:[#allocation33_spill] sm:$0xff] }
 0x475   : > { %v1119_v2 = vsub.f32 %v1115_v3, %v1117_v11 }
 0x477   : > { %v1569_v32 = vpop.eup %1568  ;;  %v1123_v21 = vadd.f32 1e-06, %v1119_v2  ;;  %v2395_v2 = vld [vmem:[#allocation38_spill] sm:$0xff] }
 0x478   : > { %v1125_v25 = vmul.f32 %v1569_v32, %v1122_v8  ;;  %vm1131_vm10 = vweird.f32 %v1569_v32 }
 0x479   : > { %1570 = vrsqrt.f32 %v1123_v21  ;;  %vm1132_vm12 = vmor %vm1130_vm11, %vm1131_vm10  ;;  %vm1140_vm14 = vweird.f32 %v1123_v21 }
 0x47a   : > { %v1126_v17 = vmul.f32 %v1569_v32, %v1125_v25 }
 0x47c   : > { %v1127_v7 = vmul.f32 0.5, %v1126_v17 }
 0x47e   : > { %v1128_v61 = vsub.f32 1.5, %v1127_v7 }
 0x47f   : > { %v1571_v15 = vpop.eup %1570 }
 0x480   : > { %v1129_v14 = vmul.f32 %v1569_v32, %v1128_v61  ;;  %v1135_v4 = vmul.f32 %v1571_v15, %v1123_v21  ;;  %vm1141_vm13 = vweird.f32 %v1571_v15  ;;  %v1462_v61 = vor.u32 %v2397_v5, %v2396_v26  ;;  %v2398_v21 = vld [vmem:[#allocation32_spill] sm:$0xff] }
 0x481   : > { %vm1142_vm15 = vmor %vm1140_vm14, %vm1141_vm13  ;;  %v1458_v10 = vor.u32 %v2399_v23, %v2398_v21 }
 0x482   : > { %v1136_v28 = vmul.f32 %v1571_v15, %v1135_v4  ;;  %v1133_v1 = vsel %vm1132_vm12, %v1569_v32, %v1129_v14  ;;  %1215 = vmatpush.bf16.msra.mxu1 %v1462_v61  ;;  %v2401_v14 = vld [vmem:[#allocation31_spill] sm:$0xff] }
 0x483   : > { %v1144_v36 = vmul.f32 %v1133_v1, %v1120_v51  ;;  %v2403_v1 = vld [vmem:[#allocation29_spill] sm:$0xff] }
 0x484   : > { %v1137_v18 = vmul.f32 0.5, %v1136_v28  ;;  %v2402_v28 = vld [vmem:[#allocation28_spill] sm:$0xff] }
 0x485   : > { %v1146_v25 = vmul.f32 %v2395_v2, %v1144_v36 }
 0x486   : > { %v1138_v52 = vsub.f32 1.5, %v1137_v18  ;;  %1216 = vmatpush.bf16.msra.mxu1 %v1458_v10  ;;  %v1450_v18 = vor.u32 %v2403_v1, %v2402_v28 }
 0x487   : > { %v1148_v8 = vadd.f32 %v2101_v6, %v1146_v25 }
 0x488   : > { %v1139_v13 = vmul.f32 %v1571_v15, %v1138_v52  ;;  %v2404_v52 = vld [vmem:[#allocation36_spill] sm:$0xff] }
 0x48a   : > { %v1143_v11 = vsel %vm1142_vm15, %v1571_v15, %v1139_v13  ;;  %v2400_v15 = vld [vmem:[#allocation30_spill] sm:$0xff] }
 0x48b   : > { %v1145_v3 = vmul.f32 %v1143_v11, %v1121_v9  ;;  %v1454_v4 = vor.u32 %v2401_v14, %v2400_v15 }
 0x48d   : > { %v1147_v17 = vmul.f32 %v2395_v2, %v1145_v3  ;;  %1217 = vmatpush.bf16.msra.mxu1 %v1454_v4 }
 0x48f   : > { %v1149_v7 = vadd.f32 %v2101_v6, %v1147_v17 }
 0x491   : > { %v1150_v32 = vpack.c.bf16 %v1149_v7, %v1148_v8  ;;  %1218 = vmatpush.bf16.msra.mxu1 %v1450_v18 }
 0x493   : > { %1446 = vmatmul.msk.bf16.vlgmr.msra.gmra.mxu0 %vm150_vm0, %v1150_v32  ;;  %v2405_v32 = vld [vmem:[#allocation37_spill] sm:$0xff] }
 0x510   : > { %v1175_v51 = vpop.f32.mrf.mxu0 }
 0x511   : > { %v1176_v36 = vadd.f32 %v2404_v52, %v1175_v51 }
 0x513   : > { %v1180_v11 = vmax.f32 %v1176_v36, 0.0 }
 0x518   : > { %v1177_v13 = vpop.f32.mrf.mxu0 }
 0x519   : > { %v1178_v9 = vadd.f32 %v2404_v52, %v1177_v13 }
 0x51b   : > { %v1181_v3 = vmax.f32 %v1178_v9, 0.0 }
 0x51d   : > { %v1182_v25 = vpack.c.bf16 %v1181_v3, %v1180_v11 }
 0x51f   : > { %1463 = vmatmul.msk.bf16.vlgmr.msra.gmra.mxu1 %vm1207_vm1, %v1182_v25 }
 0x59c   : > { %v1220_v17 = vpop.f32.mrf.mxu1 }
 0x59d   : > { %v1221_v26 = vadd.f32 %v2405_v32, %v1220_v17 }
 0x59f   : > { %v1225_v5 = vadd.f32 %v1221_v26, %v1148_v8 }
 0x5a1   : > { %v1227_v61 = vsel %vm150_vm0, %v1225_v5, 0.0  ;;  %v1235_v21 = vmul.f32 %v1225_v5, %v1225_v5 }
 0x5a2   : > { %1228 = vadd.xlane.f32.xlu2 %v1227_v61 }
 0x5a3   : > { %v1237_v23 = vsel %vm150_vm0, %v1235_v21, 0.0 }
 0x5a4   : > { %v1222_v10 = vpop.f32.mrf.mxu1  ;;  %1238 = vadd.xlane.f32.xlu1 %v1237_v23 }
 0x5a5   : > { %v1223_v15 = vadd.f32 %v2405_v32, %v1222_v10 }
 0x5a7   : > { %v1226_v14 = vadd.f32 %v1223_v15, %v1149_v7 }
 0x5a9   : > { %v1230_v4 = vsel %vm150_vm0, %v1226_v14, 0.0  ;;  %v1236_v28 = vmul.f32 %v1226_v14, %v1226_v14 }
 0x5aa   : > { %1231 = vadd.xlane.f32.xlu0 %v1230_v4 }
 0x5ab   : > { %v1240_v1 = vsel %vm150_vm0, %v1236_v28, 0.0 }
 0x5ac   : > { %1241 = vadd.xlane.f32.xlu2 %v1240_v1 }
 0x615   : > { %v1229_v18 = vpop.xlane.xlu2 %1228 }
 0x616   : > { %v1233_v8 = vmul.f32 %v1229_v18, %v2390_v22 }
 0x617   : > { %v1239_v51 = vpop.xlane.xlu1 %1238 }
 0x618   : > { %v1245_v36 = vmul.f32 %v1233_v8, %v1233_v8  ;;  %v1243_v13 = vmul.f32 %v1239_v51, %v2390_v22 }
 0x61a   : > { %v1247_v9 = vsub.f32 %v1243_v13, %v1245_v36  ;;  %v1249_v36 = vsub.f32 %v1225_v5, %v1233_v8 }
 0x61c   : > { %v1251_v11 = vadd.f32 1e-06, %v1247_v9 }
 0x61d   : > { %v1232_v3 = vpop.xlane.xlu0 %1231 }
 0x61e   : > { %1572 = vrsqrt.f32 %v1251_v11  ;;  %v1234_v7 = vmul.f32 %v1232_v3, %v2390_v22  ;;  %vm1259_vm3 = vweird.f32 %v1251_v11 }
 0x61f   : > { %v1242_v25 = vpop.xlane.xlu2 %1241 }
 0x620   : > { %v1246_v17 = vmul.f32 %v1234_v7, %v1234_v7  ;;  %v1244_v26 = vmul.f32 %v1242_v25, %v2390_v22 }
 0x622   : > { %v1248_v61 = vsub.f32 %v1244_v26, %v1246_v17 }
 0x624   : > { %v1573_v21 = vpop.eup %1572  ;;  %v1252_v23 = vadd.f32 1e-06, %v1248_v61 }
 0x625   : > { %v1254_v10 = vmul.f32 %v1573_v21, %v1251_v11  ;;  %vm1260_vm2 = vweird.f32 %v1573_v21 }
 0x626   : > { %1574 = vrsqrt.f32 %v1252_v23  ;;  %vm1261_vm4 = vmor %vm1259_vm3, %vm1260_vm2  ;;  %vm1269_vm6 = vweird.f32 %v1252_v23 }
 0x627   : > { %v1255_v15 = vmul.f32 %v1573_v21, %v1254_v10  ;;  %v1250_v10 = vsub.f32 %v1226_v14, %v1234_v7 }
 0x629   : > { %v1256_v4 = vmul.f32 0.5, %v1255_v15 }
 0x62b   : > { %v1257_v28 = vsub.f32 1.5, %v1256_v4 }
 0x62c   : > { %v1575_v1 = vpop.eup %1574 }
 0x62d   : > { %v1258_v18 = vmul.f32 %v1573_v21, %v1257_v28  ;;  %v1264_v51 = vmul.f32 %v1575_v1, %v1252_v23  ;;  %vm1270_vm5 = vweird.f32 %v1575_v1 }
 0x62e   : > { %vm1271_vm7 = vmor %vm1269_vm6, %vm1270_vm5 }
 0x62f   : > { %v1262_v13 = vsel %vm1261_vm4, %v1573_v21, %v1258_v18  ;;  %v1265_v9 = vmul.f32 %v1575_v1, %v1264_v51 }
 0x630   : > { %v1273_v3 = vmul.f32 %v1262_v13, %v1249_v36 }
 0x631   : > { %v1266_v0 = vmul.f32 0.5, %v1265_v9 }
 0x632   : > { %v1275_v25 = vmul.f32 %v2106_v55, %v1273_v3 }
 0x633   : > { %v1267_v17 = vsub.f32 1.5, %v1266_v0 }
 0x634   : > { %v1277_v26 = vadd.f32 %v2111_v16, %v1275_v25  }
 0x635   : > { %v1268_v61 = vmul.f32 %v1575_v1, %v1267_v17 }
 0x636   : > { %v2407_v21 = vmov %v1277_v26  ;;  %1279 = vst.msk [vmem:[#allocation2] sm:$0xff] (%p212_p0), %vm150_vm0, %v1277_v26 }
 0x637   : > { %v1272_v15 = vsel %vm1271_vm7, %v1575_v1, %v1268_v61 }
 0x638   : > { %v1274_v4 = vmul.f32 %v1272_v15, %v1250_v10 }
 0x63a   : > { %v1276_v11 = vmul.f32 %v2106_v55, %v1274_v4  ;;  %214 = sbr.rel (!%p212_p0) target bundleno = 161 (0xa1), region = 87 }
 0x63c   : > { %v1278_v5 = vadd.f32 %v2111_v16, %v1276_v11  }
 0x63e   : > { %v2406_v51 = vmov %v1278_v5  ;;  %1280 = vst.msk [vmem:[#allocation2 + $0x8] sm:$0xff] (%p212_p0), %vm150_vm0, %v1278_v5 }
 0x63f   :  { %1293 = dma.vmem_to_hbm [thread:$0]  %s1286_s16, 256, %s1288_s14, [#allocation3], %s1628_s17, %s1628_s17, %s1629_s18  }
 0x640   :  { %1612 = dma.done.wait [#allocation3], 256  }
 0x641   :  { %1613 = vsyncadd [#allocation3], 4294967040 }
 0x642   :  { %1298 = vsyncpa [#allocation3], 1 }

</bundles_post_ra>
